<compile_context>
chip_gen: v6e
topology: v6e:2x2x1
jax: 0.10.0
libtpu: 0.0.40
codegen_flags: <defaults>
</compile_context>

<pallas_src>
import jax
import jax.numpy as jnp
import numpy as np
from jax.experimental import pallas as pl
from jax.experimental.pallas import tpu as pltpu

BN_EPS = 1e-5  # nn.BatchNorm1d default


def _round_up(n, m=128):
    return max(m, ((n + m - 1) // m) * m)


def _pick_group(B, T, max_rows=1024):
    """Largest divisor G of B such that the (G*T, C) block is sublane-legal
    (G*T % 8 == 0) and G*T stays below max_rows; falls back to the whole
    batch in one block (always a legal full-extent block)."""
    cands = [g for g in range(1, B + 1)
             if B % g == 0 and (g * T) % 8 == 0 and g * T <= max_rows]
    return max(cands) if cands else B


# ---------------------------------------------------------------------------
# Host-side one-time parameter preparation (hoisted out of the forward path)
# ---------------------------------------------------------------------------
def prepare_params(params, in_dim, bottleneck_dim, out_dim):
    cin_p, cb_p, cout_p = (_round_up(d) for d in (in_dim, bottleneck_dim, out_dim))

    def stack_taps(w, rows_p, cols_p):
        # Conv1d weight (Cout, Cin, 2) -> ONE (2*rows_p, cols_p) bf16 matrix
        # [W_tap0 ; W_tap1] so both dilated taps become a single K=2*Cin_p
        # MXU matmul (tap0 multiplies src[t-1], tap1 multiplies src[t+1]).
        co, ci = w.shape[0], w.shape[1]
        pad = ((0, rows_p - ci), (0, cols_p - co))
        wa = jnp.pad(w[:, :, 0].T, pad)
        wb = jnp.pad(w[:, :, 1].T, pad)
        return jnp.concatenate([wa, wb], axis=0).astype(jnp.bfloat16)

    w1 = stack_taps(params["w1"], cin_p, cb_p)
    w2 = stack_taps(params["w2"], cb_p, cb_p)
    w3 = stack_taps(params["w3"], cb_p, cout_p)

    # Fold eval-mode BatchNorm into one (scale, shift) pair per channel.
    scale = params["gamma"] * jax.lax.rsqrt(params["var"] + BN_EPS)
    shift = params["beta"] - scale * params["mean"]
    bn = jnp.zeros((2, cout_p), jnp.float32)
    bn = bn.at[0, :out_dim].set(scale).at[1, :out_dim].set(shift)

    return {"w1": w1, "w2": w2, "w3": w3, "bn": bn,
            "dims": (in_dim, bottleneck_dim, out_dim),
            "padded": (cin_p, cb_p, cout_p)}


# ---------------------------------------------------------------------------
# Fused forward: factor1 -> factor2 -> factor3 -> ReLU -> folded eval-BN
# ---------------------------------------------------------------------------
def ftdnn_forward(prep, x, *, out_dtype=jnp.bfloat16, group=None):
    """FTDNNLayer.forward (eval mode).

    x: (B, T, in_dim).  Returns (B, T, cout_p) in `out_dtype`; channels
    [out_dim:cout_p) are exactly zero.  Keep the padded/bf16 layout between
    stacked layers and slice/cast only at the network boundary (avoids a full
    extra HBM pass per layer).
    """
    B, T, in_dim = x.shape
    in_dim0, _, out_dim = prep["dims"]
    assert in_dim == in_dim0
    cin_p, cb_p, cout_p = prep["padded"]

    G = _pick_group(B, T) if group is None else group
    assert B % G == 0
    xf = x.reshape(B * T, in_dim)  # metadata-only reshape (row-major)

    def kernel(x_ref, w1_ref, w2_ref, w3_ref, bn_ref, o_ref, p1_ref, p2_ref):
        bf16 = jnp.bfloat16

        # ---- stage-1 operand: row g*T+t of p1 = [x[g,t-1] | x[g,t+1]] ----
        # Pad-column strips of p1 are never written by the data stores below;
        # zero them per step (no-op when in_dim is already a multiple of 128).
        if cin_p != in_dim:
            zstrip = jnp.zeros((G * T, cin_p - in_dim), bf16)
            p1_ref[:, pl.ds(in_dim, cin_p - in_dim)] = zstrip
            p1_ref[:, pl.ds(cin_p + in_dim, cin_p - in_dim)] = zstrip
        zx = jnp.zeros((1, in_dim), bf16)
        for g in range(G):
            r = g * T
            xg = x_ref[pl.ds(r, T), :].astype(bf16)
            p1_ref[pl.ds(r, 1), pl.ds(0, in_dim)] = zx             # no t-1 at t=0
            p1_ref[pl.ds(r + 1, T - 1), pl.ds(0, in_dim)] = xg[:T - 1]
            p1_ref[pl.ds(r, T - 1), pl.ds(cin_p, in_dim)] = xg[1:]
            p1_ref[pl.ds(r + T - 1, 1), pl.ds(cin_p, in_dim)] = zx  # no t+1 at T-1
        y = jnp.dot(p1_ref[...], w1_ref[...], preferred_element_type=jnp.float32)

        # ---- stages 2 and 3: same pair trick on bf16-cast intermediates ----
        zb = jnp.zeros((1, cb_p), bf16)
        for w_ref in (w2_ref, w3_ref):
            yb = y.astype(bf16)  # bf16 intermediates (half VMEM traffic)
            for g in range(G):
                r = g * T
                p2_ref[pl.ds(r, 1), pl.ds(0, cb_p)] = zb
                p2_ref[pl.ds(r + 1, T - 1), pl.ds(0, cb_p)] = yb[r:r + T - 1]
                p2_ref[pl.ds(r, T - 1), pl.ds(cb_p, cb_p)] = yb[r + 1:r + T]
                p2_ref[pl.ds(r + T - 1, 1), pl.ds(cb_p, cb_p)] = zb
            y = jnp.dot(p2_ref[...], w_ref[...],
                        preferred_element_type=jnp.float32)

        # ---- ReLU + folded eval-BN; SharedDimScaleDropout(alpha=0) == id ----
        y = jnp.maximum(y, 0.0)
        o_ref[...] = (y * bn_ref[0:1, :] + bn_ref[1:2, :]).astype(o_ref.dtype)

    # VMEM budget derived from the actual per-step tile sizes (review item);
    # capped at 48 MiB so the same setting is valid on v7x (64 MiB VMEM).
    x_bytes = G * T * in_dim * x.dtype.itemsize
    o_bytes = G * T * cout_p * jnp.dtype(out_dtype).itemsize
    w_bytes = 2 * (2 * cin_p * cb_p + 2 * cb_p * cb_p + 2 * cb_p * cout_p)
    bn_bytes = 2 * cout_p * 4
    scratch_bytes = G * T * (2 * cin_p + 2 * cb_p) * 2
    est = 2 * (x_bytes + o_bytes + w_bytes + bn_bytes) + scratch_bytes
    vmem_limit = int(min(max(2 * est, 8 << 20), 48 << 20))

    out = pl.pallas_call(
        kernel,
        grid=(B // G,),
        in_specs=[
            pl.BlockSpec((G * T, in_dim), lambda b: (b, 0)),      # raw input
            pl.BlockSpec((2 * cin_p, cb_p), lambda b: (0, 0)),    # grid-invariant
            pl.BlockSpec((2 * cb_p, cb_p), lambda b: (0, 0)),
            pl.BlockSpec((2 * cb_p, cout_p), lambda b: (0, 0)),
            pl.BlockSpec((2, cout_p), lambda b: (0, 0)),
        ],
        out_specs=pl.BlockSpec((G * T, cout_p), lambda b: (b, 0)),
        out_shape=jax.ShapeDtypeStruct((B * T, cout_p), out_dtype),
        scratch_shapes=[
            pltpu.VMEM((G * T, 2 * cin_p), jnp.bfloat16),  # stage-1 pair buffer
            pltpu.VMEM((G * T, 2 * cb_p), jnp.bfloat16),   # stage-2/3 pair buffer
        ],
        compiler_params=pltpu.CompilerParams(
            dimension_semantics=("parallel",),
            vmem_limit_bytes=vmem_limit,
        ),
    )(xf, prep["w1"], prep["w2"], prep["w3"], prep["bn"])
    return out.reshape(B, T, cout_p)  # metadata-only reshape


# ---------------------------------------------------------------------------
# Pure-JAX reference (PyTorch FTDNNLayer.forward semantics, eval mode)
# ---------------------------------------------------------------------------
def ftdnn_reference(params, x, mxu_bf16=False):
    """mxu_bf16=False: exact f32 module semantics.
    mxu_bf16=True : same math with matmul operands (inputs, intermediates,
                    weights) rounded to bf16 and f32 accumulation, mirroring
                    the kernel's MXU precision choice."""
    cast = (lambda a: a.astype(jnp.bfloat16)) if mxu_bf16 else (lambda a: a)

    def conv(h, w):  # h (B,T,C) channel-last, w (Cout,Cin,2): k=2, dil=2, pad=1
        hp = jnp.pad(cast(h), ((0, 0), (1, 1), (0, 0)))
        t = h.shape[1]
        wa, wb = cast(w[:, :, 0].T), cast(w[:, :, 1].T)
        dot = lambda a, b: jnp.dot(a, b, preferred_element_type=jnp.float32,
                                   precision=jax.lax.Precision.HIGHEST)
        return dot(hp[:, :t, :], wa) + dot(hp[:, 2:, :], wb)

    h = conv(conv(conv(x, params["w1"]), params["w2"]), params["w3"])
    y = jnp.maximum(h, 0.0)
    inv = jax.lax.rsqrt(params["var"] + BN_EPS)
    return params["gamma"] * (y - params["mean"]) * inv + params["beta"]


def init_params(key, in_dim, bottleneck_dim, out_dim, context_size=2):
    """Random FTDNNLayer parameters (convs have no bias; BN uses running stats)."""
    ks = jax.random.split(key, 7)

    def conv_w(k, c_out, c_in):
        return (c_in * context_size) ** -0.5 * jax.random.normal(
            k, (c_out, c_in, context_size), jnp.float32)

    return {
        "w1": conv_w(ks[0], bottleneck_dim, in_dim),
        "w2": conv_w(ks[1], bottleneck_dim, bottleneck_dim),
        "w3": conv_w(ks[2], out_dim, bottleneck_dim),
        "gamma": 1.0 + 0.1 * jax.random.normal(ks[3], (out_dim,), jnp.float32),
        "beta": 0.1 * jax.random.normal(ks[4], (out_dim,), jnp.float32),
        "mean": 0.1 * jax.random.normal(ks[5], (out_dim,), jnp.float32),
        "var": 1.0 + jnp.abs(jax.random.normal(ks[6], (out_dim,), jnp.float32)),
    }


if __name__ == "__main__":
    B, T = 2, 32                          # (batch, seq_len)
    IN_DIM, BOTTLENECK, OUT_DIM = 64, 32, 64

    key = jax.random.PRNGKey(0)
    kx, kp = jax.random.split(key)
    x = jax.random.normal(kx, (B, T, IN_DIM), jnp.float32)

    params = init_params(kp, IN_DIM, BOTTLENECK, OUT_DIM)
    prep = prepare_params(params, IN_DIM, BOTTLENECK, OUT_DIM)

    fwd = jax.jit(lambda xx: ftdnn_forward(prep, xx))
    out_padded = jax.block_until_ready(fwd(x))
    cout_p = prep["padded"][2]
    assert out_padded.shape == (B, T, cout_p), out_padded.shape

    # Network-boundary slice/cast (done once here, outside the per-layer path).
    out = np.asarray(out_padded[:, :, :OUT_DIM].astype(jnp.float32))
    pad_tail = np.asarray(out_padded[:, :, OUT_DIM:].astype(jnp.float32))
    assert not np.any(pad_tail), "padded output channels must be exactly zero"

    # (1) Tight check against the same math at the kernel's precision
    #     (bf16 operands/intermediates, f32 accumulation, bf16 output).
    ref_mxu = ftdnn_reference(params, x, mxu_bf16=True)
    ref_mxu = np.asarray(ref_mxu.astype(jnp.bfloat16).astype(jnp.float32))
    np.testing.assert_allclose(out, ref_mxu, rtol=2e-2, atol=2e-2)

    # (2) Sanity check against the exact f32 PyTorch-semantics reference; the
    #     only deviation is bf16 rounding of operands/intermediates/output.
    ref_f32 = np.asarray(ftdnn_reference(params, x, mxu_bf16=False))
    np.testing.assert_allclose(out, ref_f32, rtol=6e-2, atol=6e-2)

    print("KERNEL_OK")
</pallas_src>

<mosaic_0001>
module attributes {stable_mosaic.version = 11 : i64} {
  func.func @kernel(%arg0: i32, %arg1: memref<64x64xf32, #tpu.memory_space<vmem>>, %arg2: memref<256x128xbf16, #tpu.memory_space<vmem>>, %arg3: memref<256x128xbf16, #tpu.memory_space<vmem>>, %arg4: memref<256x128xbf16, #tpu.memory_space<vmem>>, %arg5: memref<2x128xf32, #tpu.memory_space<vmem>>, %arg6: memref<64x128xbf16, #tpu.memory_space<vmem>>, %arg7: memref<64x256xbf16, #tpu.memory_space<vmem>>, %arg8: memref<64x256xbf16, #tpu.memory_space<vmem>>) attributes {dimension_semantics = [#tpu.dimension_semantics<parallel>], iteration_bounds = array<i64: 1>, scalar_prefetch = 0 : i64, scratch_operands = 2 : i64, tpu.core_type = #tpu.core_type<tc>, window_params = [{transform_indices = @transform_0, window_bounds = array<i64: 64, 64>}, {pipeline_mode = #tpu.pipeline_mode<synchronous>, transform_indices = @transform_1, window_bounds = array<i64: 256, 128>}, {pipeline_mode = #tpu.pipeline_mode<synchronous>, transform_indices = @transform_2, window_bounds = array<i64: 256, 128>}, {pipeline_mode = #tpu.pipeline_mode<synchronous>, transform_indices = @transform_3, window_bounds = array<i64: 256, 128>}, {pipeline_mode = #tpu.pipeline_mode<synchronous>, transform_indices = @transform_4, window_bounds = array<i64: 2, 128>}, {transform_indices = @transform_5, window_bounds = array<i64: 64, 128>}]} {
    %cst = arith.constant 0.000000e+00 : bf16
    %0 = vector.broadcast %cst : bf16 to vector<64x64xbf16>
    %c0 = arith.constant 0 : index
    %c64 = arith.constant 64 : index
    %1 = vector.load %arg7[%c0, %c64] : memref<64x256xbf16, #tpu.memory_space<vmem>>, vector<64x64xbf16>
    tpu.vector_store %arg7[%c0, %c64], %0 {strides = array<i32>} : memref<64x256xbf16, #tpu.memory_space<vmem>>, vector<64x64xbf16>,
    %c0_0 = arith.constant 0 : index
    %c192 = arith.constant 192 : index
    %2 = vector.load %arg7[%c0_0, %c192] : memref<64x256xbf16, #tpu.memory_space<vmem>>, vector<64x64xbf16>
    tpu.vector_store %arg7[%c0_0, %c192], %0 {strides = array<i32>} : memref<64x256xbf16, #tpu.memory_space<vmem>>, vector<64x64xbf16>,
    %cst_1 = arith.constant 0.000000e+00 : bf16
    %3 = vector.broadcast %cst_1 : bf16 to vector<1x64xbf16>
    %c0_2 = arith.constant 0 : index
    %c0_3 = arith.constant 0 : index
    %4 = vector.load %arg1[%c0_2, %c0_3] : memref<64x64xf32, #tpu.memory_space<vmem>>, vector<32x64xf32>
    %5 = arith.truncf %4 : vector<32x64xf32> to vector<32x64xbf16>
    %c0_4 = arith.constant 0 : index
    %c0_5 = arith.constant 0 : index
    %6 = vector.load %arg7[%c0_4, %c0_5] : memref<64x256xbf16, #tpu.memory_space<vmem>>, vector<1x64xbf16>
    tpu.vector_store %arg7[%c0_4, %c0_5], %3 {strides = array<i32>} : memref<64x256xbf16, #tpu.memory_space<vmem>>, vector<1x64xbf16>,
    %7 = vector.extract_strided_slice %5 {offsets = [0, 0], sizes = [31, 64], strides = [1, 1]} : vector<32x64xbf16> to vector<31x64xbf16>
    %c1 = arith.constant 1 : index
    %c0_6 = arith.constant 0 : index
    %8 = vector.load %arg7[%c1, %c0_6] : memref<64x256xbf16, #tpu.memory_space<vmem>>, vector<31x64xbf16>
    tpu.vector_store %arg7[%c1, %c0_6], %7 {strides = array<i32>} : memref<64x256xbf16, #tpu.memory_space<vmem>>, vector<31x64xbf16>,
    %9 = vector.extract_strided_slice %5 {offsets = [1, 0], sizes = [31, 64], strides = [1, 1]} : vector<32x64xbf16> to vector<31x64xbf16>
    %c0_7 = arith.constant 0 : index
    %c128 = arith.constant 128 : index
    %10 = vector.load %arg7[%c0_7, %c128] : memref<64x256xbf16, #tpu.memory_space<vmem>>, vector<31x64xbf16>
    tpu.vector_store %arg7[%c0_7, %c128], %9 {strides = array<i32>} : memref<64x256xbf16, #tpu.memory_space<vmem>>, vector<31x64xbf16>,
    %c31 = arith.constant 31 : index
    %c128_8 = arith.constant 128 : index
    %11 = vector.load %arg7[%c31, %c128_8] : memref<64x256xbf16, #tpu.memory_space<vmem>>, vector<1x64xbf16>
    tpu.vector_store %arg7[%c31, %c128_8], %3 {strides = array<i32>} : memref<64x256xbf16, #tpu.memory_space<vmem>>, vector<1x64xbf16>,
    %c32 = arith.constant 32 : index
    %c0_9 = arith.constant 0 : index
    %12 = vector.load %arg1[%c32, %c0_9] : memref<64x64xf32, #tpu.memory_space<vmem>>, vector<32x64xf32>
    %13 = arith.truncf %12 : vector<32x64xf32> to vector<32x64xbf16>
    %c32_10 = arith.constant 32 : index
    %c0_11 = arith.constant 0 : index
    %14 = vector.load %arg7[%c32_10, %c0_11] : memref<64x256xbf16, #tpu.memory_space<vmem>>, vector<1x64xbf16>
    tpu.vector_store %arg7[%c32_10, %c0_11], %3 {strides = array<i32>} : memref<64x256xbf16, #tpu.memory_space<vmem>>, vector<1x64xbf16>,
    %15 = vector.extract_strided_slice %13 {offsets = [0, 0], sizes = [31, 64], strides = [1, 1]} : vector<32x64xbf16> to vector<31x64xbf16>
    %c33 = arith.constant 33 : index
    %c0_12 = arith.constant 0 : index
    %16 = vector.load %arg7[%c33, %c0_12] : memref<64x256xbf16, #tpu.memory_space<vmem>>, vector<31x64xbf16>
    tpu.vector_store %arg7[%c33, %c0_12], %15 {strides = array<i32>} : memref<64x256xbf16, #tpu.memory_space<vmem>>, vector<31x64xbf16>,
    %17 = vector.extract_strided_slice %13 {offsets = [1, 0], sizes = [31, 64], strides = [1, 1]} : vector<32x64xbf16> to vector<31x64xbf16>
    %c32_13 = arith.constant 32 : index
    %c128_14 = arith.constant 128 : index
    %18 = vector.load %arg7[%c32_13, %c128_14] : memref<64x256xbf16, #tpu.memory_space<vmem>>, vector<31x64xbf16>
    tpu.vector_store %arg7[%c32_13, %c128_14], %17 {strides = array<i32>} : memref<64x256xbf16, #tpu.memory_space<vmem>>, vector<31x64xbf16>,
    %c63 = arith.constant 63 : index
    %c128_15 = arith.constant 128 : index
    %19 = vector.load %arg7[%c63, %c128_15] : memref<64x256xbf16, #tpu.memory_space<vmem>>, vector<1x64xbf16>
    tpu.vector_store %arg7[%c63, %c128_15], %3 {strides = array<i32>} : memref<64x256xbf16, #tpu.memory_space<vmem>>, vector<1x64xbf16>,
    %c0_16 = arith.constant 0 : index
    %c0_17 = arith.constant 0 : index
    %20 = vector.load %arg7[%c0_16, %c0_17] : memref<64x256xbf16, #tpu.memory_space<vmem>>, vector<64x256xbf16>
    %c0_18 = arith.constant 0 : index
    %c0_19 = arith.constant 0 : index
    %21 = vector.load %arg2[%c0_18, %c0_19] : memref<256x128xbf16, #tpu.memory_space<vmem>>, vector<256x128xbf16>
    %cst_20 = arith.constant dense<0.000000e+00> : vector<64x128xf32>
    %22 = tpu.matmul %20, %21, %cst_20 {dimension_numbers = #tpu.dot_dimension_numbers<[1], [0], [0], [1], [0, 0, 1, 1], [], []>} : vector<64x256xbf16>, vector<256x128xbf16>, vector<64x128xf32> -> vector<64x128xf32>
    %cst_21 = arith.constant 0.000000e+00 : bf16
    %23 = vector.broadcast %cst_21 : bf16 to vector<1x128xbf16>
    %24 = arith.truncf %22 : vector<64x128xf32> to vector<64x128xbf16>
    %c0_22 = arith.constant 0 : index
    %c0_23 = arith.constant 0 : index
    %25 = vector.load %arg8[%c0_22, %c0_23] : memref<64x256xbf16, #tpu.memory_space<vmem>>, vector<1x128xbf16>
    tpu.vector_store %arg8[%c0_22, %c0_23], %23 {strides = array<i32>} : memref<64x256xbf16, #tpu.memory_space<vmem>>, vector<1x128xbf16>,
    %26 = vector.extract_strided_slice %24 {offsets = [0, 0], sizes = [31, 128], strides = [1, 1]} : vector<64x128xbf16> to vector<31x128xbf16>
    %c1_24 = arith.constant 1 : index
    %c0_25 = arith.constant 0 : index
    %27 = vector.load %arg8[%c1_24, %c0_25] : memref<64x256xbf16, #tpu.memory_space<vmem>>, vector<31x128xbf16>
    tpu.vector_store %arg8[%c1_24, %c0_25], %26 {strides = array<i32>} : memref<64x256xbf16, #tpu.memory_space<vmem>>, vector<31x128xbf16>,
    %28 = vector.extract_strided_slice %24 {offsets = [1, 0], sizes = [31, 128], strides = [1, 1]} : vector<64x128xbf16> to vector<31x128xbf16>
    %c0_26 = arith.constant 0 : index
    %c128_27 = arith.constant 128 : index
    %29 = vector.load %arg8[%c0_26, %c128_27] : memref<64x256xbf16, #tpu.memory_space<vmem>>, vector<31x128xbf16>
    tpu.vector_store %arg8[%c0_26, %c128_27], %28 {strides = array<i32>} : memref<64x256xbf16, #tpu.memory_space<vmem>>, vector<31x128xbf16>,
    %c31_28 = arith.constant 31 : index
    %c128_29 = arith.constant 128 : index
    %30 = vector.load %arg8[%c31_28, %c128_29] : memref<64x256xbf16, #tpu.memory_space<vmem>>, vector<1x128xbf16>
    tpu.vector_store %arg8[%c31_28, %c128_29], %23 {strides = array<i32>} : memref<64x256xbf16, #tpu.memory_space<vmem>>, vector<1x128xbf16>,
    %c32_30 = arith.constant 32 : index
    %c0_31 = arith.constant 0 : index
    %31 = vector.load %arg8[%c32_30, %c0_31] : memref<64x256xbf16, #tpu.memory_space<vmem>>, vector<1x128xbf16>
    tpu.vector_store %arg8[%c32_30, %c0_31], %23 {strides = array<i32>} : memref<64x256xbf16, #tpu.memory_space<vmem>>, vector<1x128xbf16>,
    %32 = vector.extract_strided_slice %24 {offsets = [32, 0], sizes = [31, 128], strides = [1, 1]} : vector<64x128xbf16> to vector<31x128xbf16>
    %c33_32 = arith.constant 33 : index
    %c0_33 = arith.constant 0 : index
    %33 = vector.load %arg8[%c33_32, %c0_33] : memref<64x256xbf16, #tpu.memory_space<vmem>>, vector<31x128xbf16>
    tpu.vector_store %arg8[%c33_32, %c0_33], %32 {strides = array<i32>} : memref<64x256xbf16, #tpu.memory_space<vmem>>, vector<31x128xbf16>,
    %34 = vector.extract_strided_slice %24 {offsets = [33, 0], sizes = [31, 128], strides = [1, 1]} : vector<64x128xbf16> to vector<31x128xbf16>
    %c32_34 = arith.constant 32 : index
    %c128_35 = arith.constant 128 : index
    %35 = vector.load %arg8[%c32_34, %c128_35] : memref<64x256xbf16, #tpu.memory_space<vmem>>, vector<31x128xbf16>
    tpu.vector_store %arg8[%c32_34, %c128_35], %34 {strides = array<i32>} : memref<64x256xbf16, #tpu.memory_space<vmem>>, vector<31x128xbf16>,
    %c63_36 = arith.constant 63 : index
    %c128_37 = arith.constant 128 : index
    %36 = vector.load %arg8[%c63_36, %c128_37] : memref<64x256xbf16, #tpu.memory_space<vmem>>, vector<1x128xbf16>
    tpu.vector_store %arg8[%c63_36, %c128_37], %23 {strides = array<i32>} : memref<64x256xbf16, #tpu.memory_space<vmem>>, vector<1x128xbf16>,
    %c0_38 = arith.constant 0 : index
    %c0_39 = arith.constant 0 : index
    %37 = vector.load %arg8[%c0_38, %c0_39] : memref<64x256xbf16, #tpu.memory_space<vmem>>, vector<64x256xbf16>
    %c0_40 = arith.constant 0 : index
    %c0_41 = arith.constant 0 : index
    %38 = vector.load %arg3[%c0_40, %c0_41] : memref<256x128xbf16, #tpu.memory_space<vmem>>, vector<256x128xbf16>
    %cst_42 = arith.constant dense<0.000000e+00> : vector<64x128xf32>
    %39 = tpu.matmul %37, %38, %cst_42 {dimension_numbers = #tpu.dot_dimension_numbers<[1], [0], [0], [1], [0, 0, 1, 1], [], []>} : vector<64x256xbf16>, vector<256x128xbf16>, vector<64x128xf32> -> vector<64x128xf32>
    %40 = arith.truncf %39 : vector<64x128xf32> to vector<64x128xbf16>
    %c0_43 = arith.constant 0 : index
    %c0_44 = arith.constant 0 : index
    %41 = vector.load %arg8[%c0_43, %c0_44] : memref<64x256xbf16, #tpu.memory_space<vmem>>, vector<1x128xbf16>
    tpu.vector_store %arg8[%c0_43, %c0_44], %23 {strides = array<i32>} : memref<64x256xbf16, #tpu.memory_space<vmem>>, vector<1x128xbf16>,
    %42 = vector.extract_strided_slice %40 {offsets = [0, 0], sizes = [31, 128], strides = [1, 1]} : vector<64x128xbf16> to vector<31x128xbf16>
    %c1_45 = arith.constant 1 : index
    %c0_46 = arith.constant 0 : index
    %43 = vector.load %arg8[%c1_45, %c0_46] : memref<64x256xbf16, #tpu.memory_space<vmem>>, vector<31x128xbf16>
    tpu.vector_store %arg8[%c1_45, %c0_46], %42 {strides = array<i32>} : memref<64x256xbf16, #tpu.memory_space<vmem>>, vector<31x128xbf16>,
    %44 = vector.extract_strided_slice %40 {offsets = [1, 0], sizes = [31, 128], strides = [1, 1]} : vector<64x128xbf16> to vector<31x128xbf16>
    %c0_47 = arith.constant 0 : index
    %c128_48 = arith.constant 128 : index
    %45 = vector.load %arg8[%c0_47, %c128_48] : memref<64x256xbf16, #tpu.memory_space<vmem>>, vector<31x128xbf16>
    tpu.vector_store %arg8[%c0_47, %c128_48], %44 {strides = array<i32>} : memref<64x256xbf16, #tpu.memory_space<vmem>>, vector<31x128xbf16>,
    %c31_49 = arith.constant 31 : index
    %c128_50 = arith.constant 128 : index
    %46 = vector.load %arg8[%c31_49, %c128_50] : memref<64x256xbf16, #tpu.memory_space<vmem>>, vector<1x128xbf16>
    tpu.vector_store %arg8[%c31_49, %c128_50], %23 {strides = array<i32>} : memref<64x256xbf16, #tpu.memory_space<vmem>>, vector<1x128xbf16>,
    %c32_51 = arith.constant 32 : index
    %c0_52 = arith.constant 0 : index
    %47 = vector.load %arg8[%c32_51, %c0_52] : memref<64x256xbf16, #tpu.memory_space<vmem>>, vector<1x128xbf16>
    tpu.vector_store %arg8[%c32_51, %c0_52], %23 {strides = array<i32>} : memref<64x256xbf16, #tpu.memory_space<vmem>>, vector<1x128xbf16>,
    %48 = vector.extract_strided_slice %40 {offsets = [32, 0], sizes = [31, 128], strides = [1, 1]} : vector<64x128xbf16> to vector<31x128xbf16>
    %c33_53 = arith.constant 33 : index
    %c0_54 = arith.constant 0 : index
    %49 = vector.load %arg8[%c33_53, %c0_54] : memref<64x256xbf16, #tpu.memory_space<vmem>>, vector<31x128xbf16>
    tpu.vector_store %arg8[%c33_53, %c0_54], %48 {strides = array<i32>} : memref<64x256xbf16, #tpu.memory_space<vmem>>, vector<31x128xbf16>,
    %50 = vector.extract_strided_slice %40 {offsets = [33, 0], sizes = [31, 128], strides = [1, 1]} : vector<64x128xbf16> to vector<31x128xbf16>
    %c32_55 = arith.constant 32 : index
    %c128_56 = arith.constant 128 : index
    %51 = vector.load %arg8[%c32_55, %c128_56] : memref<64x256xbf16, #tpu.memory_space<vmem>>, vector<31x128xbf16>
    tpu.vector_store %arg8[%c32_55, %c128_56], %50 {strides = array<i32>} : memref<64x256xbf16, #tpu.memory_space<vmem>>, vector<31x128xbf16>,
    %c63_57 = arith.constant 63 : index
    %c128_58 = arith.constant 128 : index
    %52 = vector.load %arg8[%c63_57, %c128_58] : memref<64x256xbf16, #tpu.memory_space<vmem>>, vector<1x128xbf16>
    tpu.vector_store %arg8[%c63_57, %c128_58], %23 {strides = array<i32>} : memref<64x256xbf16, #tpu.memory_space<vmem>>, vector<1x128xbf16>,
    %c0_59 = arith.constant 0 : index
    %c0_60 = arith.constant 0 : index
    %53 = vector.load %arg8[%c0_59, %c0_60] : memref<64x256xbf16, #tpu.memory_space<vmem>>, vector<64x256xbf16>
    %c0_61 = arith.constant 0 : index
    %c0_62 = arith.constant 0 : index
    %54 = vector.load %arg4[%c0_61, %c0_62] : memref<256x128xbf16, #tpu.memory_space<vmem>>, vector<256x128xbf16>
    %cst_63 = arith.constant dense<0.000000e+00> : vector<64x128xf32>
    %55 = tpu.matmul %53, %54, %cst_63 {dimension_numbers = #tpu.dot_dimension_numbers<[1], [0], [0], [1], [0, 0, 1, 1], [], []>} : vector<64x256xbf16>, vector<256x128xbf16>, vector<64x128xf32> -> vector<64x128xf32>
    %cst_64 = arith.constant 0.000000e+00 : f32
    %56 = vector.broadcast %cst_64 : f32 to vector<64x128xf32>
    %57 = arith.maximumf %55, %56 : vector<64x128xf32>
    %c0_65 = arith.constant 0 : index
    %c0_66 = arith.constant 0 : index
    %58 = vector.load %arg5[%c0_65, %c0_66] : memref<2x128xf32, #tpu.memory_space<vmem>>, vector<1x128xf32>
    %59 = vector.broadcast %58 : vector<1x128xf32> to vector<64x128xf32>
    %60 = arith.mulf %57, %59 : vector<64x128xf32>
    %c1_67 = arith.constant 1 : index
    %c0_68 = arith.constant 0 : index
    %61 = vector.load %arg5[%c1_67, %c0_68] : memref<2x128xf32, #tpu.memory_space<vmem>>, vector<1x128xf32>
    %62 = vector.broadcast %61 : vector<1x128xf32> to vector<64x128xf32>
    %63 = arith.addf %60, %62 : vector<64x128xf32>
    %64 = arith.truncf %63 : vector<64x128xf32> to vector<64x128xbf16>
    %c0_69 = arith.constant 0 : index
    %c0_70 = arith.constant 0 : index
    %65 = vector.load %arg6[%c0_69, %c0_70] : memref<64x128xbf16, #tpu.memory_space<vmem>>, vector<64x128xbf16>
    tpu.vector_store %arg6[%c0_69, %c0_70], %64 {strides = array<i32>} : memref<64x128xbf16, #tpu.memory_space<vmem>>, vector<64x128xbf16>,
    return
  }
  func.func @transform_0(%arg0: i32) -> (i32, i32) {
    %c0_i32 = arith.constant 0 : i32
    %c0_i32_0 = arith.constant 0 : i32
    return %arg0, %c0_i32 : i32, i32
  }
  func.func @transform_1(%arg0: i32) -> (i32, i32) {
    %c0_i32 = arith.constant 0 : i32
    %c0_i32_0 = arith.constant 0 : i32
    %c0_i32_1 = arith.constant 0 : i32
    return %c0_i32, %c0_i32_0 : i32, i32
  }
  func.func @transform_2(%arg0: i32) -> (i32, i32) {
    %c0_i32 = arith.constant 0 : i32
    %c0_i32_0 = arith.constant 0 : i32
    %c0_i32_1 = arith.constant 0 : i32
    return %c0_i32, %c0_i32_0 : i32, i32
  }
  func.func @transform_3(%arg0: i32) -> (i32, i32) {
    %c0_i32 = arith.constant 0 : i32
    %c0_i32_0 = arith.constant 0 : i32
    %c0_i32_1 = arith.constant 0 : i32
    return %c0_i32, %c0_i32_0 : i32, i32
  }
  func.func @transform_4(%arg0: i32) -> (i32, i32) {
    %c0_i32 = arith.constant 0 : i32
    %c0_i32_0 = arith.constant 0 : i32
    %c0_i32_1 = arith.constant 0 : i32
    return %c0_i32, %c0_i32_0 : i32, i32
  }
  func.func @transform_5(%arg0: i32) -> (i32, i32) {
    %c0_i32 = arith.constant 0 : i32
    %c0_i32_0 = arith.constant 0 : i32
    return %arg0, %c0_i32 : i32, i32
  }
}

</mosaic_0001>

<bundles_post_ra>
// kernel: _lambda_.1
= control target key start
LH: loop header
LB: loop body
LE: loop exit
PB: predicated region body
PF: predicated region fallthrough
CT: control target
= control target key end

     0   :  { %10 = vsyncpa [#allocation5], 0  ;;  %s2263_s0 = inlined_call_operand.hbm [shape: f32[64,64], index: 0, kind: input, shape index: {}]   ;;  %s2264_s1 = inlined_call_operand.hbm [shape: bf16[256,128], index: 1, kind: input, shape index: {}]   ;;  %s2265_s2 = inlined_call_operand.hbm [shape: bf16[256,128], index: 2, kind: input, shape index: {}]   ;;  %s2266_s3 = inlined_call_operand.hbm [shape: bf16[256,128], index: 3, kind: input, shape index: {}]   ;;  %s2267_s4 = inlined_call_operand.vmem [shape: f32[2,128], index: 4, kind: input, shape index: {}]   ;;  %s2268_s5 = inlined_call_operand.hbm [shape: bf16[64,128], index: 5, kind: output, shape index: {}]  }
   0x1   :  { %11 = vsyncpa [#allocation8], 0 }
   0x2   :  { %12 = vsyncpa [#allocation11], 0 }
   0x3   :  { %13 = vsyncpa [#allocation6], 0  ;;  %s1984_s18 = smov [#allocation7]  }
   0x4   :  { %s31_s19 = sshll.u32 %s1984_s18, 4  ;;  %s32_s19 = int_to_ptr.vmem [resolvable:$true] %s31_s19 }
   0x5   :  { %s1884_s20 = scalar_lea.vmem %s32_s19, 2048  ;;  %p1889_p1 = scmp.lt.s32.totalorder %s32_s19, %s32_s19 }
   0x6   :  { %p1885_p0 = scmp.ne.s32.totalorder %s32_s19, %s1884_s20  ;;  %p1890_p2 = scmp.lt.s32.totalorder %s1884_s20, %s1884_s20 }
   0x8   :  { %p1891_p3 = por %p1890_p2, %p1889_p1 }
   0xa   :  { %p1892_p4 = pnand %p1891_p3, %p1885_p0 }
   0xc   :  { %1895 = shalt.err (!%p1892_p4)
}
   0xd   :  { %s1985_s21 = smov 64   ;;  %s1986_s22 = smov 4  }
   0xe   :  { %37 = dma.hbm_to_vmem [thread:$0]  %s2264_s1, 2048, %s32_s19, [#allocation8], %s1985_s21, %s1985_s21, %s1986_s22  }
   0xf   :  { %s1987_s25 = smov [#allocation4]  }
  0x10   :  { %s19_s26 = sshll.u32 %s1987_s25, 4  ;;  %s20_s26 = int_to_ptr.vmem [resolvable:$true] %s19_s26 }
  0x11   :  { %s1904_s27 = scalar_lea.vmem %s20_s26, 1024  ;;  %p1909_p6 = scmp.lt.s32.totalorder %s20_s26, %s20_s26 }
  0x12   :  { %p1905_p5 = scmp.ne.s32.totalorder %s20_s26, %s1904_s27  ;;  %p1910_p7 = scmp.lt.s32.totalorder %s1904_s27, %s1904_s27 }
  0x14   :  { %p1911_p8 = por %p1910_p7, %p1909_p6 }
  0x16   :  { %p1912_p9 = pnand %p1911_p8, %p1905_p5 }
  0x18   :  { %1915 = shalt.err (!%p1912_p9)
}
  0x19   :  { %s1988_s28 = smov 128   ;;  %s1989_s29 = smov 8  }
  0x1a   :  { %25 = dma.hbm_to_vmem [thread:$0]  %s2263_s0, 1024, %s20_s26, [#allocation5], %s1988_s28, %s1988_s28, %s1989_s29  }
  0x1b   :  { %s1990_s7 = smov [#allocation9]   ;;  %s1991_s9 = smov [#allocation10]  }
  0x1c   :  { %s43_s8 = sshll.u32 %s1990_s7, 4  ;;  %s55_s1 = sshll.u32 %s1991_s9, 4  ;;  %s44_s8 = int_to_ptr.vmem [resolvable:$true] %s43_s8  ;;  %s56_s1 = int_to_ptr.vmem [resolvable:$true] %s55_s1 }
  0x1d   :  { %s1924_s10 = scalar_lea.vmem %s44_s8, 2048  ;;  %p1929_p11 = scmp.lt.s32.totalorder %s44_s8, %s44_s8 }
  0x1e   :  { %p1925_p10 = scmp.ne.s32.totalorder %s44_s8, %s1924_s10  ;;  %p1930_p12 = scmp.lt.s32.totalorder %s1924_s10, %s1924_s10 }
  0x20   :  { %p1931_p13 = por %p1930_p12, %p1929_p11 }
  0x22   :  { %p1932_p0 = pnand %p1931_p13, %p1925_p10 }
  0x24   :  { %1935 = shalt.err (!%p1932_p0)
}
  0x25   :  { %49 = dma.hbm_to_vmem [thread:$0]  %s2265_s2, 2048, %s44_s8, [#allocation8], %s1985_s21, %s1985_s21, %s1986_s22  }
  0x26   :  { %s1944_s0 = scalar_lea.vmem %s56_s1, 2048  ;;  %p1949_p2 = scmp.lt.s32.totalorder %s56_s1, %s56_s1 }
  0x27   :  { %p1945_p1 = scmp.ne.s32.totalorder %s56_s1, %s1944_s0  ;;  %p1950_p3 = scmp.lt.s32.totalorder %s1944_s0, %s1944_s0 }
  0x29   :  { %p1951_p4 = por %p1950_p3, %p1949_p2 }
  0x2b   :  { %p1952_p5 = pnand %p1951_p4, %p1945_p1 }
  0x2d   :  { %1955 = shalt.err (!%p1952_p5)
}
  0x2e   :  { %61 = dma.hbm_to_vmem [thread:$0]  %s2266_s3, 2048, %s56_s1, [#allocation11], %s1985_s21, %s1985_s21, %s1986_s22  }
  0x2f   :  { %1976 = dma.done.wait [#allocation5], 1024  }
  0x30   :  { %1977 = vsyncadd [#allocation5], 4294966272 }
  0x31   :  { %1978 = dma.done.wait [#allocation8], 4096  }
  0x32   :  { %1979 = vsyncadd [#allocation8], 4294963200 }
  0x33   :  { %1980 = dma.done.wait [#allocation11], 2048  }
  0x34   :  { %1981 = vsyncadd [#allocation11], 4294965248  ;;  %vm77_vm0 = vcmask 1043968   ;;  %v1992_v0 = vmov 0   ;;  %v1794_v1 = vld [vmem:[#allocation7 + $0x78] sm:$0xff]   ;;  %v1796_v3 = vld [vmem:[#allocation7 + $0x70] sm:$0xff]  }
  0x35   :  { %78 = vst.msk [vmem:[#allocation2] sm:$0xf] %vm77_vm0, %v1992_v0  ;;  %79 = vst.msk [vmem:[#allocation2 + $0x8] sm:$0xf] %vm77_vm0, %v1992_v0  ;;  %v1795_v2 = vld [vmem:[#allocation7 + $0x38] sm:$0xff]   ;;  %1648 = vmatprep.subr.bf16.mxu0 %v1794_v1  ;;  %v1797_v4 = vld [vmem:[#allocation7 + $0x30] sm:$0xff]  }
  0x36   :  { %86 = vst.msk [vmem:[#allocation2 + $0x4] sm:$0xf] %vm77_vm0, %v1992_v0  ;;  %87 = vst.msk [vmem:[#allocation2 + $0xc] sm:$0xf] %vm77_vm0, %v1992_v0  ;;  %1649 = vmatpush3.bf16.msra.mxu0 %v1795_v2  ;;  %v1798_v5 = vld [vmem:[#allocation7 + $0x68] sm:$0xff]   ;;  %v1800_v7 = vld [vmem:[#allocation7 + $0x60] sm:$0xff]  }
  0x37   :  { %80 = vst.msk [vmem:[#allocation2 + $0x10] sm:$0xf] %vm77_vm0, %v1992_v0  ;;  %81 = vst.msk [vmem:[#allocation2 + $0x18] sm:$0xf] %vm77_vm0, %v1992_v0  ;;  %1650 = vmatprep.subr.bf16.mxu0 %v1796_v3  ;;  %v1799_v6 = vld [vmem:[#allocation7 + $0x28] sm:$0xff]   ;;  %vm100_vm1 = vcmask 516096  }
  0x38   :  { %82 = vst.msk [vmem:[#allocation2 + $0x20] sm:$0xf] %vm77_vm0, %v1992_v0  ;;  %83 = vst.msk [vmem:[#allocation2 + $0x28] sm:$0xf] %vm77_vm0, %v1992_v0  ;;  %vm101_vm2 = vsmask.f32 256 }
  0x39   :  { %84 = vst.msk [vmem:[#allocation2 + $0x30] sm:$0xf] %vm77_vm0, %v1992_v0  ;;  %85 = vst.msk [vmem:[#allocation2 + $0x38] sm:$0xf] %vm77_vm0, %v1992_v0  ;;  %v1801_v8 = vld [vmem:[#allocation7 + $0x20] sm:$0xff]   ;;  %v1802_v9 = vld [vmem:[#allocation7 + $0x58] sm:$0xff]  }
  0x3a   :  { %88 = vst.msk [vmem:[#allocation2 + $0x14] sm:$0xf] %vm77_vm0, %v1992_v0  ;;  %89 = vst.msk [vmem:[#allocation2 + $0x1c] sm:$0xf] %vm77_vm0, %v1992_v0  ;;  %1651 = vmatpush3.bf16.msra.mxu0 %v1797_v4  ;;  %v1803_v11 = vld [vmem:[#allocation7 + $0x18] sm:$0xff]   ;;  %v1804_v12 = vld [vmem:[#allocation7 + $0x50] sm:$0xff]  }
  0x3b   :  { %90 = vst.msk [vmem:[#allocation2 + $0x24] sm:$0xf] %vm77_vm0, %v1992_v0  ;;  %91 = vst.msk [vmem:[#allocation2 + $0x2c] sm:$0xf] %vm77_vm0, %v1992_v0  ;;  %1652 = vmatprep.subr.bf16.mxu0 %v1798_v5  ;;  %v94_v13 = vld [vmem:[#allocation4] sm:$0xff]  ;;  %v95_v14 = vld [vmem:[#allocation4 + $0x8] sm:$0xff] }
  0x3c   :  { %92 = vst.msk [vmem:[#allocation2 + $0x34] sm:$0xf] %vm77_vm0, %v1992_v0  ;;  %93 = vst.msk [vmem:[#allocation2 + $0x3c] sm:$0xf] %vm77_vm0, %v1992_v0  ;;  %v96_v15 = vld [vmem:[#allocation4 + $0x10] sm:$0xff]  ;;  %vm156_vm5 = vcmask 519168   ;;  %v1593_v17 = vpack.c.bf16 %v94_v13, %v94_v13  ;;  %v1594_v18 = vpack.c.bf16 %v95_v14, %v95_v14 }
  0x3d   :  { %vm2062_vm3 = vmand %vm100_vm1, %vm101_vm2  ;;  %vm116_vm4 = vsmask.f32 4368  ;;  %v103_v16 = vld [vmem:[#allocation2] sm:$0x1]  ;;  %v1595_v19 = vpack.c.bf16 %v96_v15, %v96_v15  ;;  %vm157_vm6 = vsmask.f32 7938 }
  0x3e   :  { %1653 = vmatpush3.bf16.msra.mxu0 %v1799_v6  ;;  %v97_v20 = vld [vmem:[#allocation4 + $0x18] sm:$0xff]  ;;  %v104_v21 = vsel %vm2062_vm3, 0, %v103_v16  ;;  %vm166_vm7 = vsmask.f32 3328  ;;  %vm167_vm8 = vsmask.f32 7440  ;;  %vm2070_vm9 = vmor %vm101_vm2, %vm116_vm4 }
  0x3f   :  { %1654 = vmatprep.subr.bf16.mxu0 %v1800_v7  ;;  %v1596_v22 = vpack.c.bf16 %v97_v20, %v97_v20  ;;  %v1805_v23 = vld [vmem:[#allocation7 + $0x10] sm:$0xff]   ;;  %105 = vst [vmem:[#allocation2] sm:$0x1] %v104_v21  ;;  %v119_v24 = vshrl.u32 %v1593_v17, 16  ;;  %v122_v25 = vshll.u32 %v1593_v17, 16  ;;  %v127_v26 = vshrl.u32 %v1594_v18, 16  ;;  %vm2076_vm10 = vmand %vm156_vm5, %vm157_vm6 }
  0x40   :  { %v130_v27 = vshll.u32 %v1594_v18, 16  ;;  %v1806_v28 = vld [vmem:[#allocation7 + $0x48] sm:$0xff]   ;;  %v136_v29 = vshrl.u32 %v1595_v19, 16  ;;  %v139_v30 = vshll.u32 %v1595_v19, 16  ;;  %v1808_v39 = vld [vmem:[#allocation7 + $0x40] sm:$0xff]   ;;  %v1822_v50 = vld [vmem:[#allocation9 + $0x78] sm:$0xff]  }
  0x41   :  { %v145_v31 = vshrl.u32 %v1596_v22, 16  ;;  %v148_v32 = vshll.u32 %v1596_v22, 16  ;;  %v1807_v33 = vld [vmem:[#allocation7 + $0x8] sm:$0xff]   ;;  %v121_v35 = vrot.slane %v119_v24, 7  ;;  %v129_v36 = vrot.slane %v127_v26, 7  ;;  %vm2082_vm11 = vmor %vm166_vm7, %vm167_vm8  ;;  %v205_v56 = vld [vmem:[#allocation4 + $0x20] sm:$0xff]  ;;  %1688 = vmatprep.subr.bf16.mxu1 %v1822_v50 }
  0x42   :  { %1655 = vmatpush3.bf16.msra.mxu0 %v1801_v8  ;;  %v169_v37 = vrot.slane %v119_v24, 4  ;;  %v170_v38 = vrot.slane %v122_v25, 5  ;;  %v173_v41 = vrot.slane %v130_v27, 5  ;;  %v175_v42 = vrot.slane %v127_v26, 4  ;;  %v211_v49 = vld [vmem:[#allocation2 + $0x20] sm:$0x1]  ;;  %vm2102_vm12 = vmand %vm156_vm5, %vm166_vm7 }
  0x43   :  { %1656 = vmatprep.subr.bf16.mxu0 %v1802_v9  ;;  %v178_v43 = vrot.slane %v139_v30, 5  ;;  %v180_v44 = vrot.slane %v136_v29, 4  ;;  %v124_v45 = vor.u32 %v122_v25, %v121_v35  ;;  %v125_v46 = vrot.slane %v121_v35, 4  ;;  %v1809_v57 = vld [vmem:[#allocation7] sm:$0xff]   ;;  %v206_v62 = vld [vmem:[#allocation4 + $0x28] sm:$0xff]  ;;  %v207_v4 = vld [vmem:[#allocation4 + $0x30] sm:$0xff] }
  0x44   :  { %v132_v47 = vor.u32 %v130_v27, %v129_v36  ;;  %v171_v48 = vor.u32 %v170_v38, %v169_v37  ;;  %v176_v52 = vor.u32 %v175_v42, %v173_v41  ;;  %v134_v54 = vrot.slane %v129_v36, 4  ;;  %v208_v9 = vld [vmem:[#allocation4 + $0x38] sm:$0xff] }
  0x45   :  { %v181_v53 = vor.u32 %v180_v44, %v178_v43  ;;  %v138_v55 = vrot.slane %v136_v29, 7  ;;  %v147_v60 = vrot.slane %v145_v31, 7  ;;  %v183_v61 = vrot.slane %v148_v32, 5  ;;  %v196_v15 = vld [vmem:[#allocation2 + $0x1c] sm:$0xf] }
  0x46   :  { %1657 = vmatpush3.bf16.msra.mxu0 %v1803_v11  ;;  %v133_v58 = vsel %vm2070_vm9, %v125_v46, %v132_v47  ;;  %v172_v59 = vrot.slane %v171_v48, 4  ;;  %v159_v63 = vld [vmem:[#allocation2] sm:$0xf]  ;;  %v177_v0 = vrot.slane %v176_v52, 4  ;;  %v185_v8 = vrot.slane %v145_v31, 4  ;;  %v1823_v14 = vld [vmem:[#allocation9 + $0x38] sm:$0xff]  }
  0x47   :  { %1658 = vmatprep.subr.bf16.mxu0 %v1804_v12  ;;  %163 = vst.msk [vmem:[#allocation2 + $0x8] sm:$0xf] %vm156_vm5, %v133_v58  ;;  %v182_v1 = vrot.slane %v181_v53, 4  ;;  %v141_v2 = vor.u32 %v139_v30, %v138_v55  ;;  %v143_v3 = vrot.slane %v138_v55, 4  ;;  %v160_v5 = vsel %vm2076_vm10, %v124_v45, %v159_v63  ;;  %1689 = vmatpush3.bf16.msra.mxu1 %v1823_v14 }
  0x48   :  { %v174_v6 = vsel %vm2082_vm11, %v172_v59, %v173_v41  ;;  %v150_v7 = vor.u32 %v148_v32, %v147_v60  ;;  %161 = vst [vmem:[#allocation2] sm:$0xf] %v160_v5  ;;  %v179_v11 = vsel %vm2082_vm11, %v177_v0, %v178_v43  ;;  %vm199_vm13 = vcmask 519171  }
  0x49   :  { %192 = vst.msk [vmem:[#allocation2 + $0x4] sm:$0xf] %vm156_vm5, %v174_v6  ;;  %v142_v12 = vsel %vm2070_vm9, %v134_v54, %v141_v2  ;;  %v184_v13 = vsel %vm2082_vm11, %v182_v1, %v183_v61  ;;  %vm200_vm14 = vsmask.f32 7950  ;;  %v212_v16 = vsel %vm2062_vm3, 0, %v211_v49 }
  0x4a   :  { %1659 = vmatpush3.bf16.msra.mxu0 %v1805_v23  ;;  %193 = vst.msk [vmem:[#allocation2 + $0xc] sm:$0xf] %vm156_vm5, %v179_v11  ;;  %v151_v17 = vsel %vm2070_vm9, %v143_v3, %v150_v7  ;;  %164 = vst.msk [vmem:[#allocation2 + $0x10] sm:$0xf] %vm156_vm5, %v142_v12  ;;  %v186_v18 = vor.u32 %v185_v8, %v183_v61  ;;  %v1597_v19 = vpack.c.bf16 %v205_v56, %v205_v56  ;;  %v294_v6 = vld [vmem:[#allocation2 + $0x3c] sm:$0xf] }
  0x4b   :  { %1660 = vmatprep.subr.bf16.mxu0 %v1806_v28  ;;  %194 = vst.msk [vmem:[#allocation2 + $0x14] sm:$0xf] %vm156_vm5, %v184_v13  ;;  %213 = vst [vmem:[#allocation2 + $0x20] sm:$0x1] %v212_v16  ;;  %v1598_v20 = vpack.c.bf16 %v206_v62, %v206_v62  ;;  %v1599_v21 = vpack.c.bf16 %v207_v4, %v207_v4  ;;  %v1600_v22 = vpack.c.bf16 %v208_v9, %v208_v9  ;;  %vm545_vm0 = vcmask 1040384  }
  0x4c   :  { %165 = vst.msk [vmem:[#allocation2 + $0x18] sm:$0xf] %vm156_vm5, %v151_v17  ;;  %v187_v10 = vrot.slane %v186_v18, 4  ;;  %v225_v23 = vshrl.u32 %v1597_v19, 16  ;;  %v228_v24 = vshll.u32 %v1597_v19, 16  ;;  %vm2123_vm15 = vmand %vm199_vm13, %vm200_vm14 }
  0x4d   :  { %v233_v25 = vshrl.u32 %v1598_v20, 16  ;;  %v236_v26 = vshll.u32 %v1598_v20, 16  ;;  %v245_v27 = vshll.u32 %v1599_v21, 16  ;;  %v242_v28 = vshrl.u32 %v1599_v21, 16  ;;  %vm2149_vm1 = vmand %vm545_vm0, %vm101_vm2 }
  0x4e   :  { %1661 = vmatpush3.bf16.msra.mxu0 %v1807_v33  ;;  %v251_v29 = vshrl.u32 %v1600_v22, 16  ;;  %v197_v30 = vsel %vm2102_vm12, %v187_v10, %v196_v15  ;;  %v227_v31 = vrot.slane %v225_v23, 7  ;;  %v268_v33 = vrot.slane %v225_v23, 4 }
  0x4f   :  { %1662 = vmatprep.subr.bf16.mxu0 %v1808_v39  ;;  %v235_v32 = vrot.slane %v233_v25, 7  ;;  %198 = vst [vmem:[#allocation2 + $0x1c] sm:$0xf] %v197_v30  ;;  %v269_v35 = vrot.slane %v228_v24, 5  ;;  %v272_v36 = vrot.slane %v236_v26, 5  ;;  %v274_v37 = vrot.slane %v233_v25, 4 }
  0x50   :  { %v277_v38 = vrot.slane %v245_v27, 5  ;;  %v230_v39 = vor.u32 %v228_v24, %v227_v31  ;;  %v231_v41 = vrot.slane %v227_v31, 4  ;;  %v1810_v44 = vld [vmem:[#allocation2] ss:$8 sps:$4 sm:$0xff]   ;;  %v244_v48 = vrot.slane %v242_v28, 7  ;;  %v1824_v24 = vld [vmem:[#allocation9 + $0x70] sm:$0xff]  }
  0x51   :  { %v238_v42 = vor.u32 %v236_v26, %v235_v32  ;;  %v240_v43 = vrot.slane %v235_v32, 4  ;;  %v1812_v45 = vld [vmem:[#allocation2 + $0x4] ss:$8 sps:$4 sm:$0xff]   ;;  %v270_v46 = vor.u32 %v269_v35, %v268_v33  ;;  %v275_v47 = vor.u32 %v274_v37, %v272_v36  ;;  %v1825_v25 = vld [vmem:[#allocation9 + $0x30] sm:$0xff]   ;;  %1690 = vmatprep.subr.bf16.mxu1 %v1824_v24  ;;  %v1830_v30 = vld [vmem:[#allocation9 + $0x58] sm:$0xff]  }
  0x52   :  { %1663 = vmatpush3.bf16.msra.mxu0 %v1809_v57  ;;  %v262_v50 = vld [vmem:[#allocation2 + $0x20] sm:$0xf]  ;;  %v253_v52 = vrot.slane %v251_v29, 7  ;;  %v254_v53 = vshll.u32 %v1600_v22, 16  ;;  %v279_v54 = vrot.slane %v242_v28, 4  ;;  %508 = vmatprep.mubr.bf16.mxu0 %v1812_v45  ;;  %v247_v58 = vor.u32 %v245_v27, %v244_v48  ;;  %v1826_v26 = vld [vmem:[#allocation9 + $0x68] sm:$0xff]  }
  0x53   :  { %v239_v49 = vsel %vm2070_vm9, %v231_v41, %v238_v42  ;;  %v263_v55 = vsel %vm2076_vm10, %v230_v39, %v262_v50  ;;  %v271_v56 = vrot.slane %v270_v46, 4  ;;  %v276_v57 = vrot.slane %v275_v47, 4  ;;  %v1815_v16 = vld [vmem:[#allocation2 + $0x10] ss:$8 sps:$4 sm:$0xff]   ;;  %v547_v22 = vld [vmem:[#allocation3] sm:$0x1]  ;;  %1691 = vmatpush3.bf16.msra.mxu1 %v1825_v25 }
  0x54   :  { %265 = vst.msk [vmem:[#allocation2 + $0x28] sm:$0xf] %vm156_vm5, %v239_v49  ;;  %264 = vst [vmem:[#allocation2 + $0x20] sm:$0xf] %v263_v55  ;;  %v249_v60 = vrot.slane %v244_v48, 4  ;;  %v256_v61 = vor.u32 %v254_v53, %v253_v52  ;;  %v280_v62 = vor.u32 %v279_v54, %v277_v38  ;;  %v282_v63 = vrot.slane %v254_v53, 5  ;;  %1692 = vmatprep.subr.bf16.mxu1 %v1826_v26 }
  0x55   :  { %509 = vmatmul.mubr.bf16.vlgmr.msra.gmra.mxu0 %v1810_v44  ;;  %v273_v40 = vsel %vm2082_vm11, %v271_v56, %v272_v36  ;;  %v278_v0 = vsel %vm2082_vm11, %v276_v57, %v277_v38  ;;  %v248_v1 = vsel %vm2070_vm9, %v240_v43, %v247_v58  ;;  %v284_v2 = vrot.slane %v251_v29, 4  ;;  %v1827_v27 = vld [vmem:[#allocation9 + $0x28] sm:$0xff]   ;;  %v1828_v28 = vld [vmem:[#allocation9 + $0x60] sm:$0xff]   ;;  %v1831_v31 = vld [vmem:[#allocation9 + $0x18] sm:$0xff]  }
  0x56   :  { %v202_v3 = vld [vmem:[#allocation2 + $0x1c] sm:$0x8]  ;;  %291 = vst.msk [vmem:[#allocation2 + $0x24] sm:$0xf] %vm156_vm5, %v273_v40  ;;  %292 = vst.msk [vmem:[#allocation2 + $0x2c] sm:$0xf] %vm156_vm5, %v278_v0  ;;  %v257_v4 = vsel %vm2070_vm9, %v249_v60, %v256_v61 }
  0x57   :  { %266 = vst.msk [vmem:[#allocation2 + $0x30] sm:$0xf] %vm156_vm5, %v248_v1  ;;  %v281_v5 = vrot.slane %v280_v62, 4  ;;  %v203_v7 = vsel %vm2123_vm15, 0, %v202_v3  ;;  %267 = vst.msk [vmem:[#allocation2 + $0x38] sm:$0xf] %vm156_vm5, %v257_v4  ;;  %v285_v8 = vor.u32 %v284_v2, %v282_v63  ;;  %1693 = vmatpush3.bf16.msra.mxu1 %v1827_v27 }
  0x58   :  { %204 = vst [vmem:[#allocation2 + $0x1c] sm:$0x8] %v203_v7  ;;  %v548_v23 = vsel %vm2149_vm1, 0, %v547_v22  ;;  %v1829_v29 = vld [vmem:[#allocation9 + $0x20] sm:$0xff]   ;;  %1694 = vmatprep.subr.bf16.mxu1 %v1828_v28  ;;  %v1832_v32 = vld [vmem:[#allocation9 + $0x50] sm:$0xff]   ;;  %v1834_v37 = vld [vmem:[#allocation9 + $0x48] sm:$0xff]  }
  0x59   :  { %v283_v9 = vsel %vm2082_vm11, %v281_v5, %v282_v63  ;;  %v286_v11 = vrot.slane %v285_v8, 4  ;;  %549 = vst [vmem:[#allocation3] sm:$0x1] %v548_v23  ;;  %v1833_v33 = vld [vmem:[#allocation9 + $0x10] sm:$0xff]   ;;  %v641_v35 = vld [vmem:[#allocation3 + $0x20] sm:$0x1] }
  0x5a   :  { %293 = vst.msk [vmem:[#allocation2 + $0x34] sm:$0xf] %vm156_vm5, %v283_v9  ;;  %v642_v36 = vsel %vm2149_vm1, 0, %v641_v35  ;;  %v1835_v38 = vld [vmem:[#allocation9 + $0x8] sm:$0xff]   ;;  %v1836_v39 = vld [vmem:[#allocation9 + $0x40] sm:$0xff]   ;;  %vm598_vm2 = vcmask 1043456  }
  0x5b   :  { %v295_v12 = vsel %vm2102_vm12, %v286_v11, %v294_v6  ;;  %v1818_v18 = vld [vmem:[#allocation2 + $0x20] ss:$8 sps:$4 sm:$0xff]   ;;  %1695 = vmatpush3.bf16.msra.mxu1 %v1829_v29  ;;  %643 = vst [vmem:[#allocation3 + $0x20] sm:$0x1] %v642_v36  ;;  %vm2159_vm3 = vmand %vm598_vm2, %vm157_vm6  ;;  %vm636_vm5 = vcmask 1043459  }
  0x5c   :  { %296 = vst [vmem:[#allocation2 + $0x3c] sm:$0xf] %v295_v12  ;;  %1696 = vmatprep.subr.bf16.mxu1 %v1830_v30  ;;  %v1837_v41 = vld [vmem:[#allocation9] sm:$0xff]   ;;  %vm2177_vm4 = vmand %vm598_vm2, %vm166_vm7 }
  0x5d   :  { %v1816_v13 = vld [vmem:[#allocation2 + $0x24] ss:$8 sps:$4 sm:$0xff]   ;;  %vm2195_vm6 = vmand %vm636_vm5, %vm200_vm14 }
  0x5e   :  { %v1821_v21 = vld [vmem:[#allocation2 + $0x30] ss:$8 sps:$4 sm:$0xff]  }
  0x5f   :  { %v1813_v15 = vld [vmem:[#allocation2 + $0x14] ss:$8 sps:$4 sm:$0xff]   ;;  %1697 = vmatpush3.bf16.msra.mxu1 %v1831_v31 }
  0x60   :  { %516 = vmatprep.mubr.bf16.mxu0 %v1813_v15  ;;  %1698 = vmatprep.subr.bf16.mxu1 %v1832_v32  ;;  %v600_v57 = vld [vmem:[#allocation3] sm:$0xf] }
  0x61   :  { %517 = vmatmul.mubr.bf16.gmra.mxu0 %v1815_v16 }
  0x62   :  { %524 = vmatprep.mubr.bf16.mxu0 %v1816_v13 }
  0x63   :  { %v297_v17 = vld [vmem:[#allocation2 + $0x3c] sm:$0x8]  ;;  %1699 = vmatpush3.bf16.msra.mxu1 %v1833_v33 }
  0x64   :  { %v298_v19 = vsel %vm2123_vm15, 0, %v297_v17  ;;  %1700 = vmatprep.subr.bf16.mxu1 %v1834_v37 }
  0x65   :  { %299 = vst [vmem:[#allocation2 + $0x3c] sm:$0x8] %v298_v19 }
  0x67   :  { %1701 = vmatpush3.bf16.msra.mxu1 %v1835_v38 }
  0x68   :  { %1702 = vmatprep.subr.bf16.mxu1 %v1836_v39 }
  0x69   :  { %525 = vmatmul.mubr.bf16.gmra.mxu0 %v1818_v18 }
  0x6b   :  { %1703 = vmatpush3.bf16.msra.mxu1 %v1837_v41 }
  0x6c   :  { %v1819_v20 = vld [vmem:[#allocation2 + $0x34] ss:$8 sps:$4 sm:$0xff]  }
  0x6d   :  { %532 = vmatprep.mubr.bf16.mxu0 %v1819_v20 }
  0x71   :  { %533 = vmatmul.mubr.bf16.gmra.mxu0 %v1821_v21 }
 0x115   :  { %v1664_v42 = vpop.f32.mrf.mxu0 }
 0x117   :  { %v1665_v43 = vpop.f32.mrf.mxu0 }
 0x118   :  { %v1666_v44 = vadd.f32 %v1665_v43, %v1664_v42 }
 0x119   :  { %v1667_v45 = vpop.f32.mrf.mxu0 }
 0x11a   :  { %v1601_v46 = vpack.c.bf16 %v1666_v44, %v1666_v44 }
 0x11b   :  { %v1668_v47 = vpop.f32.mrf.mxu0 }
 0x11c   :  { %v561_v48 = vshrl.u32 %v1601_v46, 16  ;;  %v564_v49 = vshll.u32 %v1601_v46, 16  ;;  %v1669_v50 = vadd.f32 %v1668_v47, %v1667_v45 }
 0x11e   :  { %v563_v52 = vrot.slane %v561_v48, 7  ;;  %v606_v53 = vrot.slane %v561_v48, 4  ;;  %v607_v54 = vrot.slane %v564_v49, 5  ;;  %v1602_v55 = vpack.c.bf16 %v1669_v50, %v1669_v50  ;;  %v633_v50 = vld [vmem:[#allocation3 + $0x1c] sm:$0xf] }
 0x120   :  { %v566_v58 = vor.u32 %v564_v49, %v563_v52  ;;  %v608_v59 = vor.u32 %v607_v54, %v606_v53  ;;  %v569_v60 = vshrl.u32 %v1602_v55, 16  ;;  %v572_v61 = vshll.u32 %v1602_v55, 16 }
 0x121   :  { %v1670_v2 = vpop.f32.mrf.mxu0  ;;  %v567_v3 = vrot.slane %v563_v52, 4 }
 0x122   :  { %v601_v62 = vsel %vm2159_vm3, %v566_v58, %v600_v57  ;;  %v609_v63 = vrot.slane %v608_v59, 4  ;;  %v571_v40 = vrot.slane %v569_v60, 7  ;;  %v612_v0 = vrot.slane %v569_v60, 4  ;;  %v692_v59 = vld [vmem:[#allocation3 + $0x20] sm:$0xf] }
 0x123   :  { %602 = vst [vmem:[#allocation3] sm:$0xf] %v601_v62  ;;  %v610_v1 = vrot.slane %v572_v61, 5  ;;  %v1671_v6 = vpop.f32.mrf.mxu0 }
 0x124   :  { %v574_v4 = vor.u32 %v572_v61, %v571_v40  ;;  %v1672_v9 = vadd.f32 %v1671_v6, %v1670_v2  ;;  %v576_v24 = vrot.slane %v571_v40, 4 }
 0x125   :  { %v611_v5 = vsel %vm2082_vm11, %v609_v63, %v610_v1  ;;  %v613_v8 = vor.u32 %v612_v0, %v610_v1  ;;  %v1673_v11 = vpop.f32.mrf.mxu0 }
 0x126   :  { %v575_v7 = vsel %vm2070_vm9, %v567_v3, %v574_v4  ;;  %629 = vst [vmem:[#allocation3 + $0x4] sm:$0xf] %v611_v5  ;;  %v1603_v12 = vpack.c.bf16 %v1672_v9, %v1672_v9 }
 0x127   :  { %603 = vst [vmem:[#allocation3 + $0x8] sm:$0xf] %v575_v7  ;;  %v1674_v13 = vpop.f32.mrf.mxu0  ;;  %v614_v15 = vrot.slane %v613_v8, 4 }
 0x128   :  { %v578_v16 = vshrl.u32 %v1603_v12, 16  ;;  %v581_v17 = vshll.u32 %v1603_v12, 16  ;;  %v1675_v18 = vadd.f32 %v1674_v13, %v1673_v11 }
 0x129   :  { %v1676_v19 = vpop.f32.mrf.mxu0 }
 0x12a   :  { %v580_v20 = vrot.slane %v578_v16, 7  ;;  %v615_v21 = vrot.slane %v581_v17, 5  ;;  %v617_v14 = vrot.slane %v578_v16, 4  ;;  %v1604_v22 = vpack.c.bf16 %v1675_v18, %v1675_v18  ;;  %v975_v41 = vld [vmem:[#allocation3] sm:$0x1] }
 0x12b   :  { %v1677_v23 = vpop.f32.mrf.mxu0  ;;  %v976_v54 = vsel %vm2149_vm1, 0, %v975_v41 }
 0x12c   :  { %v583_v25 = vor.u32 %v581_v17, %v580_v20  ;;  %v616_v26 = vsel %vm2082_vm11, %v614_v15, %v615_v21  ;;  %v618_v27 = vor.u32 %v617_v14, %v615_v21  ;;  %v587_v28 = vshrl.u32 %v1604_v22, 16 }
 0x12d   :  { %630 = vst [vmem:[#allocation3 + $0xc] sm:$0xf] %v616_v26  ;;  %v590_v29 = vshll.u32 %v1604_v22, 16  ;;  %v1678_v30 = vadd.f32 %v1677_v23, %v1676_v19  ;;  %v1679_v31 = vpop.f32.mrf.mxu0  ;;  %v585_v42 = vrot.slane %v580_v20, 4  ;;  %v730_v62 = vld [vmem:[#allocation3] sm:$0xff] }
 0x12e   :  { %v584_v32 = vsel %vm2070_vm9, %v576_v24, %v583_v25  ;;  %v619_v33 = vrot.slane %v618_v27, 4  ;;  %v589_v35 = vrot.slane %v587_v28, 7  ;;  %v622_v37 = vrot.slane %v587_v28, 4  ;;  %977 = vst [vmem:[#allocation3] sm:$0x1] %v976_v54 }
 0x12f   :  { %604 = vst [vmem:[#allocation3 + $0x10] sm:$0xf] %v584_v32  ;;  %v620_v36 = vrot.slane %v590_v29, 5  ;;  %v1605_v38 = vpack.c.bf16 %v1678_v30, %v1678_v30  ;;  %v1680_v39 = vpop.f32.mrf.mxu0  ;;  %v1584_v26 = vld [vmem:[%s2267_s4 + $0x1] ss:$0 sm:$0xff] }
 0x130   :  { %v1681_v43 = vadd.f32 %v1680_v39, %v1679_v31  ;;  %v592_v44 = vor.u32 %v590_v29, %v589_v35 }
 0x131   :  { %v621_v45 = vsel %vm2082_vm11, %v619_v33, %v620_v36  ;;  %v623_v46 = vor.u32 %v622_v37, %v620_v36  ;;  %v655_v47 = vshrl.u32 %v1605_v38, 16  ;;  %v1682_v48 = vpop.f32.mrf.mxu0  ;;  %v658_v52 = vshll.u32 %v1605_v38, 16 }
 0x132   :  { %631 = vst [vmem:[#allocation3 + $0x14] sm:$0xf] %v621_v45  ;;  %v1606_v53 = vpack.c.bf16 %v1681_v43, %v1681_v43  ;;  %v593_v55 = vsel %vm2070_vm9, %v585_v42, %v592_v44 }
 0x133   :  { %v624_v57 = vrot.slane %v623_v46, 4  ;;  %v657_v58 = vrot.slane %v655_v47, 7  ;;  %v698_v60 = vrot.slane %v655_v47, 4  ;;  %v1683_v61 = vpop.f32.mrf.mxu0  ;;  %605 = vst [vmem:[#allocation3 + $0x18] sm:$0xf] %v593_v55  ;;  %v699_v63 = vrot.slane %v658_v52, 5 }
 0x134   :  { %v663_v40 = vshrl.u32 %v1606_v53, 16  ;;  %v666_v0 = vshll.u32 %v1606_v53, 16  ;;  %v1684_v1 = vadd.f32 %v1683_v61, %v1682_v48  ;;  %v731_v2 = vld [vmem:[#allocation3 + $0x8] sm:$0xff]  ;;  %v724_v53 = vld [vmem:[#allocation3 + $0x3c] sm:$0xf] }
 0x135   :  { %v1838_v3 = vld [vmem:[#allocation3 + $0x4] ss:$8 sps:$4 sm:$0xff]   ;;  %v634_v4 = vsel %vm2177_vm4, %v624_v57, %v633_v50  ;;  %v660_v5 = vor.u32 %v658_v52, %v657_v58  ;;  %v1685_v6 = vpop.f32.mrf.mxu0  ;;  %v1527_v7 = vcombine.low %v730_v62, %v731_v2  ;;  %v700_v8 = vor.u32 %v699_v63, %v698_v60 }
 0x136   :  { %635 = vst [vmem:[#allocation3 + $0x1c] sm:$0xf] %v634_v4  ;;  %v665_v9 = vrot.slane %v663_v40, 7  ;;  %v702_v11 = vrot.slane %v666_v0, 5  ;;  %v704_v12 = vrot.slane %v663_v40, 4  ;;  %938 = vmatprep.mubr.bf16.mxu1 %v1838_v3  ;;  %v1607_v15 = vpack.c.bf16 %v1684_v1, %v1684_v1  ;;  %v1848_v3 = vld [vmem:[#allocation10 + $0x78] sm:$0xff]  }
 0x137   :  { %v693_v13 = vsel %vm2159_vm3, %v660_v5, %v692_v59  ;;  %v1686_v16 = vpop.f32.mrf.mxu0  ;;  %939 = vmatmul.mubr.bf16.vlgmr.msra.gmra.mxu1 %v1527_v7  ;;  %v661_v17 = vrot.slane %v657_v58, 4  ;;  %v701_v18 = vrot.slane %v700_v8, 4  ;;  %v1849_v4 = vld [vmem:[#allocation10 + $0x38] sm:$0xff]   ;;  %1728 = vmatprep.subr.bf16.mxu0 %v1848_v3  ;;  %v1850_v5 = vld [vmem:[#allocation10 + $0x70] sm:$0xff]   ;;  %v1852_v7 = vld [vmem:[#allocation10 + $0x68] sm:$0xff]  }
 0x138   :  { %694 = vst [vmem:[#allocation3 + $0x20] sm:$0xf] %v693_v13  ;;  %v668_v19 = vor.u32 %v666_v0, %v665_v9  ;;  %v705_v20 = vor.u32 %v704_v12, %v702_v11  ;;  %v672_v21 = vshrl.u32 %v1607_v15, 16  ;;  %v675_v14 = vshll.u32 %v1607_v15, 16  ;;  %1768 = vmatprep.subr.bf16.mxu1 %v1848_v3  ;;  %1729 = vmatpush3.bf16.msra.mxu0 %v1849_v4  ;;  %v1853_v8 = vld [vmem:[#allocation10 + $0x28] sm:$0xff]   ;;  %v1856_v12 = vld [vmem:[#allocation10 + $0x58] sm:$0xff]  }
 0x139   :  { %v1687_v22 = vadd.f32 %v1686_v16, %v1685_v6  ;;  %v703_v24 = vsel %vm2082_vm11, %v701_v18, %v702_v11  ;;  %v670_v32 = vrot.slane %v665_v9, 4  ;;  %1776 = vmatpush3.bf16.msra.mxu1 %v1849_v4  ;;  %v1851_v6 = vld [vmem:[#allocation10 + $0x30] sm:$0xff]   ;;  %1730 = vmatprep.subr.bf16.mxu0 %v1850_v5  ;;  %v1854_v9 = vld [vmem:[#allocation10 + $0x60] sm:$0xff]   ;;  %v1857_v13 = vld [vmem:[#allocation10 + $0x18] sm:$0xff]  }
 0x13a   :  { %v669_v23 = vsel %vm2070_vm9, %v661_v17, %v668_v19  ;;  %v706_v25 = vrot.slane %v705_v20, 4  ;;  %721 = vst [vmem:[#allocation3 + $0x24] sm:$0xf] %v703_v24  ;;  %v674_v27 = vrot.slane %v672_v21, 7  ;;  %v707_v28 = vrot.slane %v675_v14, 5  ;;  %1769 = vmatprep.subr.bf16.mxu1 %v1850_v5  ;;  %v1855_v11 = vld [vmem:[#allocation10 + $0x20] sm:$0xff]  }
 0x13b   :  { %695 = vst [vmem:[#allocation3 + $0x28] sm:$0xf] %v669_v23  ;;  %v709_v29 = vrot.slane %v672_v21, 4  ;;  %v1608_v30 = vpack.c.bf16 %v1687_v22, %v1687_v22  ;;  %v1842_v61 = vld [vmem:[#allocation3 + $0x10] ss:$8 sps:$4 sm:$0xff]   ;;  %v1860_v17 = vld [vmem:[#allocation10 + $0x48] sm:$0xff]  }
 0x13c   :  { %v677_v33 = vor.u32 %v675_v14, %v674_v27  ;;  %v708_v35 = vsel %vm2082_vm11, %v706_v25, %v707_v28  ;;  %v679_v46 = vrot.slane %v674_v27, 4  ;;  %1731 = vmatpush3.bf16.msra.mxu0 %v1851_v6  ;;  %v1858_v15 = vld [vmem:[#allocation10 + $0x50] sm:$0xff]   ;;  %v1861_v18 = vld [vmem:[#allocation10 + $0x8] sm:$0xff]   ;;  %v1862_v19 = vld [vmem:[#allocation10 + $0x40] sm:$0xff]  }
 0x13d   :  { %v638_v31 = vld [vmem:[#allocation3 + $0x1c] sm:$0x8]  ;;  %v710_v36 = vor.u32 %v709_v29, %v707_v28  ;;  %722 = vst [vmem:[#allocation3 + $0x2c] sm:$0xf] %v708_v35  ;;  %v681_v38 = vshrl.u32 %v1608_v30, 16  ;;  %v684_v39 = vshll.u32 %v1608_v30, 16  ;;  %1777 = vmatpush3.bf16.msra.mxu1 %v1851_v6  ;;  %1732 = vmatprep.subr.bf16.mxu0 %v1852_v7 }
 0x13e   :  { %v639_v37 = vsel %vm2195_vm6, 0, %v638_v31  ;;  %v678_v41 = vsel %vm2070_vm9, %v670_v32, %v677_v33  ;;  %1770 = vmatprep.subr.bf16.mxu1 %v1852_v7  ;;  %v1859_v16 = vld [vmem:[#allocation10 + $0x10] sm:$0xff]   ;;  %v1863_v20 = vld [vmem:[#allocation10] sm:$0xff]  }
 0x13f   :  { %640 = vst [vmem:[#allocation3 + $0x1c] sm:$0x8] %v639_v37  ;;  %v711_v42 = vrot.slane %v710_v36, 4  ;;  %696 = vst [vmem:[#allocation3 + $0x30] sm:$0xf] %v678_v41  ;;  %v683_v43 = vrot.slane %v681_v38, 7 }
 0x140   :  { %v712_v44 = vrot.slane %v684_v39, 5  ;;  %v714_v45 = vrot.slane %v681_v38, 4  ;;  %v1064_v52 = vld [vmem:[#allocation3 + $0x20] sm:$0x1]  ;;  %1733 = vmatpush3.bf16.msra.mxu0 %v1853_v8 }
 0x141   :  { %v686_v47 = vor.u32 %v684_v39, %v683_v43  ;;  %v1065_v58 = vsel %vm2149_vm1, 0, %v1064_v52  ;;  %1778 = vmatpush3.bf16.msra.mxu1 %v1853_v8  ;;  %1734 = vmatprep.subr.bf16.mxu0 %v1854_v9  ;;  %v1026_v38 = vld [vmem:[#allocation3] sm:$0xf] }
 0x142   :  { %v713_v48 = vsel %vm2082_vm11, %v711_v42, %v712_v44  ;;  %v715_v50 = vor.u32 %v714_v45, %v712_v44  ;;  %1066 = vst [vmem:[#allocation3 + $0x20] sm:$0x1] %v1065_v58  ;;  %1771 = vmatprep.subr.bf16.mxu1 %v1854_v9 }
 0x143   :  { %723 = vst [vmem:[#allocation3 + $0x34] sm:$0xf] %v713_v48  ;;  %v687_v54 = vsel %vm2070_vm9, %v679_v46, %v686_v47 }
 0x144   :  { %v716_v55 = vrot.slane %v715_v50, 4  ;;  %697 = vst [vmem:[#allocation3 + $0x38] sm:$0xf] %v687_v54  ;;  %v1843_v57 = vld [vmem:[#allocation3 + $0x24] ss:$8 sps:$4 sm:$0xff]   ;;  %1735 = vmatpush3.bf16.msra.mxu0 %v1855_v11 }
 0x145   :  { %v735_v62 = vld [vmem:[#allocation3 + $0x28] sm:$0xff]  ;;  %1779 = vmatpush3.bf16.msra.mxu1 %v1855_v11  ;;  %1736 = vmatprep.subr.bf16.mxu0 %v1856_v12 }
 0x146   :  { %v725_v59 = vsel %vm2177_vm4, %v716_v55, %v724_v53  ;;  %v1840_v60 = vld [vmem:[#allocation3 + $0x14] ss:$8 sps:$4 sm:$0xff]   ;;  %1772 = vmatprep.subr.bf16.mxu1 %v1856_v12 }
 0x147   :  { %726 = vst [vmem:[#allocation3 + $0x3c] sm:$0xf] %v725_v59  ;;  %946 = vmatprep.mubr.bf16.mxu1 %v1840_v60 }
 0x148   :  { %947 = vmatmul.mubr.bf16.gmra.mxu1 %v1842_v61  ;;  %1737 = vmatpush3.bf16.msra.mxu0 %v1857_v13 }
 0x149   :  { %954 = vmatprep.mubr.bf16.mxu1 %v1843_v57  ;;  %v734_v40 = vld [vmem:[#allocation3 + $0x20] sm:$0xff]  ;;  %1780 = vmatpush3.bf16.msra.mxu1 %v1857_v13 }
 0x14a   :  { %v1531_v1 = vcombine.low %v734_v40, %v735_v62  ;;  %1738 = vmatprep.subr.bf16.mxu0 %v1858_v15  ;;  %1773 = vmatprep.subr.bf16.mxu1 %v1858_v15 }
 0x14b   :  { %v1847_v2 = vld [vmem:[#allocation3 + $0x30] ss:$8 sps:$4 sm:$0xff]  }
 0x14c   :  { %1739 = vmatpush3.bf16.msra.mxu0 %v1859_v16 }
 0x14d   :  { %1781 = vmatpush3.bf16.msra.mxu1 %v1859_v16  ;;  %1740 = vmatprep.subr.bf16.mxu0 %v1860_v17 }
 0x14e   :  { %v727_v63 = vld [vmem:[#allocation3 + $0x3c] sm:$0x8]  ;;  %1774 = vmatprep.subr.bf16.mxu1 %v1860_v17 }
 0x14f   :  { %v728_v0 = vsel %vm2195_vm6, 0, %v727_v63 }
 0x150   :  { %729 = vst [vmem:[#allocation3 + $0x3c] sm:$0x8] %v728_v0  ;;  %955 = vmatmul.mubr.bf16.gmra.mxu1 %v1531_v1  ;;  %1741 = vmatpush3.bf16.msra.mxu0 %v1861_v18 }
 0x151   :  { %1782 = vmatpush3.bf16.msra.mxu1 %v1861_v18  ;;  %1742 = vmatprep.subr.bf16.mxu0 %v1862_v19 }
 0x152   :  { %1775 = vmatprep.subr.bf16.mxu1 %v1862_v19 }
 0x154   :  { %1743 = vmatpush3.bf16.msra.mxu0 %v1863_v20 }
 0x155   :  { %1783 = vmatpush3.bf16.msra.mxu1 %v1863_v20 }
 0x157   :  { %v1845_v10 = vld [vmem:[#allocation3 + $0x34] ss:$8 sps:$4 sm:$0xff]  }
 0x158   :  { %962 = vmatprep.mubr.bf16.mxu1 %v1845_v10 }
 0x159   :  { %963 = vmatmul.mubr.bf16.gmra.mxu1 %v1847_v2 }
 0x1f7   :  { %v1704_v21 = vpop.f32.mrf.mxu1 }
 0x1f9   :  { %v1705_v14 = vpop.f32.mrf.mxu1 }
 0x1fa   :  { %v1706_v22 = vadd.f32 %v1705_v14, %v1704_v21 }
 0x1fb   :  { %v1707_v23 = vpop.f32.mrf.mxu1 }
 0x1fc   :  { %v1609_v24 = vpack.c.bf16 %v1706_v22, %v1706_v22 }
 0x1fd   :  { %v1708_v25 = vpop.f32.mrf.mxu1 }
 0x1fe   :  { %v989_v27 = vshrl.u32 %v1609_v24, 16  ;;  %v992_v28 = vshll.u32 %v1609_v24, 16  ;;  %v1709_v29 = vadd.f32 %v1708_v25, %v1707_v23 }
 0x200   :  { %v991_v30 = vrot.slane %v989_v27, 7  ;;  %v1032_v31 = vrot.slane %v989_v27, 4  ;;  %v1033_v32 = vrot.slane %v992_v28, 5  ;;  %v1610_v33 = vpack.c.bf16 %v1709_v29, %v1709_v29 }
 0x202   :  { %v994_v35 = vor.u32 %v992_v28, %v991_v30  ;;  %v1034_v36 = vor.u32 %v1033_v32, %v1032_v31  ;;  %v997_v37 = vshrl.u32 %v1610_v33, 16  ;;  %v1000_v39 = vshll.u32 %v1610_v33, 16  ;;  %v1058_v32 = vld [vmem:[#allocation3 + $0x1c] sm:$0xf] }
 0x203   :  { %v995_v45 = vrot.slane %v991_v30, 4 }
 0x204   :  { %v1027_v41 = vsel %vm2159_vm3, %v994_v35, %v1026_v38  ;;  %v1035_v42 = vrot.slane %v1034_v36, 4  ;;  %v999_v43 = vrot.slane %v997_v37, 7  ;;  %v1036_v44 = vrot.slane %v1000_v39, 5 }
 0x205   :  { %1028 = vst [vmem:[#allocation3] sm:$0xf] %v1027_v41  ;;  %v1038_v50 = vrot.slane %v997_v37, 4 }
 0x206   :  { %v1002_v46 = vor.u32 %v1000_v39, %v999_v43  ;;  %v1037_v47 = vsel %vm2082_vm11, %v1035_v42, %v1036_v44  ;;  %v1004_v4 = vrot.slane %v999_v43, 4 }
 0x207   :  { %1055 = vst [vmem:[#allocation3 + $0x4] sm:$0xf] %v1037_v47  ;;  %v1039_v55 = vor.u32 %v1038_v50, %v1036_v44 }
 0x208   :  { %v1003_v48 = vsel %vm2070_vm9, %v995_v45, %v1002_v46  ;;  %v1710_v52 = vpop.f32.mrf.mxu1  ;;  %v1115_v46 = vld [vmem:[#allocation3 + $0x20] sm:$0xf] }
 0x209   :  { %1029 = vst [vmem:[#allocation3 + $0x8] sm:$0xf] %v1003_v48  ;;  %v1040_v63 = vrot.slane %v1039_v55, 4 }
 0x20a   :  { %v1711_v53 = vpop.f32.mrf.mxu1 }
 0x20b   :  { %v1712_v54 = vadd.f32 %v1711_v53, %v1710_v52 }
 0x20c   :  { %v1713_v57 = vpop.f32.mrf.mxu1 }
 0x20d   :  { %v1611_v58 = vpack.c.bf16 %v1712_v54, %v1712_v54 }
 0x20e   :  { %v1714_v59 = vpop.f32.mrf.mxu1 }
 0x20f   :  { %v1006_v60 = vshrl.u32 %v1611_v58, 16  ;;  %v1009_v61 = vshll.u32 %v1611_v58, 16  ;;  %v1715_v62 = vadd.f32 %v1714_v59, %v1713_v57 }
 0x210   :  { %v1716_v40 = vpop.f32.mrf.mxu1  ;;  %v1864_v41 = vld [vmem:[#allocation3] ss:$8 sps:$4 sm:$0xff]  }
 0x211   :  { %v1008_v0 = vrot.slane %v1006_v60, 7  ;;  %v1041_v1 = vrot.slane %v1009_v61, 5  ;;  %v1043_v10 = vrot.slane %v1006_v60, 4  ;;  %v1612_v2 = vpack.c.bf16 %v1715_v62, %v1715_v62 }
 0x212   :  { %v1717_v3 = vpop.f32.mrf.mxu1 }
 0x213   :  { %v1011_v5 = vor.u32 %v1009_v61, %v1008_v0  ;;  %v1042_v6 = vsel %vm2082_vm11, %v1040_v63, %v1041_v1  ;;  %v1044_v7 = vor.u32 %v1043_v10, %v1041_v1  ;;  %v1015_v8 = vshrl.u32 %v1612_v2, 16 }
 0x214   :  { %1056 = vst [vmem:[#allocation3 + $0xc] sm:$0xf] %v1042_v6  ;;  %v1018_v9 = vshll.u32 %v1612_v2, 16  ;;  %v1718_v11 = vadd.f32 %v1717_v3, %v1716_v40  ;;  %v1719_v12 = vpop.f32.mrf.mxu1  ;;  %v1013_v21 = vrot.slane %v1008_v0, 4 }
 0x215   :  { %v1012_v13 = vsel %vm2070_vm9, %v1004_v4, %v1011_v5  ;;  %v1045_v15 = vrot.slane %v1044_v7, 4  ;;  %v1017_v16 = vrot.slane %v1015_v8, 7  ;;  %v1048_v18 = vrot.slane %v1015_v8, 4 }
 0x216   :  { %1030 = vst [vmem:[#allocation3 + $0x10] sm:$0xf] %v1012_v13  ;;  %v1046_v17 = vrot.slane %v1018_v9, 5  ;;  %v1613_v19 = vpack.c.bf16 %v1718_v11, %v1718_v11  ;;  %v1720_v20 = vpop.f32.mrf.mxu1 }
 0x217   :  { %v1721_v14 = vadd.f32 %v1720_v20, %v1719_v12  ;;  %v1020_v22 = vor.u32 %v1018_v9, %v1017_v16 }
 0x218   :  { %v1047_v23 = vsel %vm2082_vm11, %v1045_v15, %v1046_v17  ;;  %v1049_v24 = vor.u32 %v1048_v18, %v1046_v17  ;;  %v1078_v25 = vshrl.u32 %v1613_v19, 16  ;;  %v1081_v27 = vshll.u32 %v1613_v19, 16 }
 0x219   :  { %1057 = vst [vmem:[#allocation3 + $0x14] sm:$0xf] %v1047_v23  ;;  %v1614_v28 = vpack.c.bf16 %v1721_v14, %v1721_v14  ;;  %v1722_v29 = vpop.f32.mrf.mxu1  ;;  %v1021_v30 = vsel %vm2070_vm9, %v1013_v21, %v1020_v22 }
 0x21a   :  { %v1050_v31 = vrot.slane %v1049_v24, 4  ;;  %v1080_v33 = vrot.slane %v1078_v25, 7  ;;  %v1121_v35 = vrot.slane %v1078_v25, 4  ;;  %1031 = vst [vmem:[#allocation3 + $0x18] sm:$0xf] %v1021_v30  ;;  %v1122_v36 = vrot.slane %v1081_v27, 5 }
 0x21b   :  { %v1086_v37 = vshrl.u32 %v1614_v28, 16  ;;  %v1089_v38 = vshll.u32 %v1614_v28, 16  ;;  %v1723_v39 = vpop.f32.mrf.mxu1  ;;  %v1866_v45 = vld [vmem:[#allocation3 + $0x4] ss:$8 sps:$4 sm:$0xff]   ;;  %v1147_v25 = vld [vmem:[#allocation3 + $0x3c] sm:$0xf] }
 0x21c   :  { %v1059_v42 = vsel %vm2177_vm4, %v1050_v31, %v1058_v32  ;;  %v1083_v43 = vor.u32 %v1081_v27, %v1080_v33  ;;  %v1724_v44 = vadd.f32 %v1723_v39, %v1722_v29  ;;  %v1123_v47 = vor.u32 %v1122_v36, %v1121_v35  ;;  %1361 = vmatprep.mubr.bf16.mxu0 %v1866_v45  ;;  %v1583_v39 = vld [vmem:[%s2267_s4] ss:$0 sm:$0xff]  ;;  %s1993_s4 = smov [#allocation12]  }
 0x21d   :  { %1060 = vst [vmem:[#allocation3 + $0x1c] sm:$0xf] %v1059_v42  ;;  %v1088_v48 = vrot.slane %v1086_v37, 7  ;;  %v1125_v50 = vrot.slane %v1089_v38, 5  ;;  %v1127_v52 = vrot.slane %v1086_v37, 4  ;;  %v1725_v53 = vpop.f32.mrf.mxu1  ;;  %v1084_v57 = vrot.slane %v1080_v33, 4  ;;  %1362 = vmatmul.mubr.bf16.vlgmr.msra.gmra.mxu0 %v1864_v41 }
 0x21e   :  { %v1116_v54 = vsel %vm2159_vm3, %v1083_v43, %v1115_v46  ;;  %v1615_v55 = vpack.c.bf16 %v1724_v44, %v1724_v44  ;;  %v1124_v58 = vrot.slane %v1123_v47, 4  ;;  %s1473_s17 = sshll.u32 %s1993_s4, 4  ;;  %s1474_s17 = int_to_ptr.vmem [resolvable:$true] %s1473_s17 }
 0x21f   :  { %1117 = vst [vmem:[#allocation3 + $0x20] sm:$0xf] %v1116_v54  ;;  %v1091_v59 = vor.u32 %v1089_v38, %v1088_v48  ;;  %v1128_v60 = vor.u32 %v1127_v52, %v1125_v50  ;;  %v1726_v61 = vpop.f32.mrf.mxu1  ;;  %v1093_v6 = vrot.slane %v1088_v48, 4  ;;  %s1956_s18 = scalar_lea.vmem %s1474_s17, 512  ;;  %p1961_p7 = scmp.lt.s32.totalorder %s1474_s17, %s1474_s17 }
 0x220   :  { %v1095_v62 = vshrl.u32 %v1615_v55, 16  ;;  %v1098_v63 = vshll.u32 %v1615_v55, 16  ;;  %v1727_v40 = vadd.f32 %v1726_v61, %v1725_v53  ;;  %v1126_v1 = vsel %vm2082_vm11, %v1124_v58, %v1125_v50  ;;  %p1957_p6 = scmp.ne.s32.totalorder %s1474_s17, %s1956_s18  ;;  %p1962_p8 = scmp.lt.s32.totalorder %s1956_s18, %s1956_s18 }
 0x221   :  { %v1092_v0 = vsel %vm2070_vm9, %v1084_v57, %v1091_v59  ;;  %v1129_v56 = vrot.slane %v1128_v60, 4  ;;  %1144 = vst [vmem:[#allocation3 + $0x24] sm:$0xf] %v1126_v1  ;;  %v1872_v31 = vld [vmem:[#allocation3 + $0x10] ss:$8 sps:$4 sm:$0xff]  }
 0x222   :  { %1118 = vst [vmem:[#allocation3 + $0x28] sm:$0xf] %v1092_v0  ;;  %v1097_v10 = vrot.slane %v1095_v62, 7  ;;  %v1130_v2 = vrot.slane %v1098_v63, 5  ;;  %v1132_v3 = vrot.slane %v1095_v62, 4  ;;  %v1616_v4 = vpack.c.bf16 %v1727_v40, %v1727_v40  ;;  %p1963_p9 = por %p1962_p8, %p1961_p7 }
 0x224   :  { %v1061_v5 = vld [vmem:[#allocation3 + $0x1c] sm:$0x8]  ;;  %v1100_v7 = vor.u32 %v1098_v63, %v1097_v10  ;;  %v1131_v8 = vsel %vm2082_vm11, %v1129_v56, %v1130_v2  ;;  %v1133_v9 = vor.u32 %v1132_v3, %v1130_v2  ;;  %v1104_v12 = vshrl.u32 %v1616_v4, 16  ;;  %p1964_p10 = pnand %p1963_p9, %p1957_p6 }
 0x225   :  { %v1062_v11 = vsel %vm2195_vm6, 0, %v1061_v5  ;;  %1145 = vst [vmem:[#allocation3 + $0x2c] sm:$0xf] %v1131_v8  ;;  %v1107_v13 = vshll.u32 %v1616_v4, 16  ;;  %v1102_v20 = vrot.slane %v1097_v10, 4 }
 0x226   :  { %1063 = vst [vmem:[#allocation3 + $0x1c] sm:$0x8] %v1062_v11  ;;  %v1101_v15 = vsel %vm2070_vm9, %v1093_v6, %v1100_v7  ;;  %v1134_v16 = vrot.slane %v1133_v9, 4  ;;  %v1106_v17 = vrot.slane %v1104_v12, 7  ;;  %v1137_v19 = vrot.slane %v1104_v12, 4 }
 0x227   :  { %1119 = vst [vmem:[#allocation3 + $0x30] sm:$0xf] %v1101_v15  ;;  %v1135_v18 = vrot.slane %v1107_v13, 5 }
 0x228   :  { %v1109_v21 = vor.u32 %v1107_v13, %v1106_v17 }
 0x229   :  { %v1136_v14 = vsel %vm2082_vm11, %v1134_v16, %v1135_v18  ;;  %v1138_v22 = vor.u32 %v1137_v19, %v1135_v18  ;;  %v1867_v27 = vld [vmem:[#allocation3 + $0x20] ss:$8 sps:$4 sm:$0xff]  }
 0x22a   :  { %1146 = vst [vmem:[#allocation3 + $0x34] sm:$0xf] %v1136_v14  ;;  %v1110_v23 = vsel %vm2070_vm9, %v1102_v20, %v1109_v21 }
 0x22b   :  { %v1139_v24 = vrot.slane %v1138_v22, 4  ;;  %1120 = vst [vmem:[#allocation3 + $0x38] sm:$0xf] %v1110_v23 }
 0x22c   :  { %v1869_v28 = vld [vmem:[#allocation3 + $0x24] ss:$8 sps:$4 sm:$0xff]  }
 0x22d   :  { %v1148_v29 = vsel %vm2177_vm4, %v1139_v24, %v1147_v25  ;;  %v1870_v30 = vld [vmem:[#allocation3 + $0x14] ss:$8 sps:$4 sm:$0xff]   ;;  %1377 = vmatprep.mubr.bf16.mxu1 %v1869_v28 }
 0x22e   :  { %1149 = vst [vmem:[#allocation3 + $0x3c] sm:$0xf] %v1148_v29  ;;  %1369 = vmatprep.mubr.bf16.mxu0 %v1870_v30  ;;  %1378 = vmatmul.mubr.bf16.vlgmr.msra.gmra.mxu1 %v1867_v27 }
 0x22f   :  { %1370 = vmatmul.mubr.bf16.gmra.mxu0 %v1872_v31 }
 0x232   :  { %v1875_v33 = vld [vmem:[#allocation3 + $0x30] ss:$8 sps:$4 sm:$0xff]  }
 0x235   :  { %v1150_v51 = vld [vmem:[#allocation3 + $0x3c] sm:$0x8] }
 0x236   :  { %v1151_v34 = vsel %vm2195_vm6, 0, %v1150_v51 }
 0x237   :  { %1152 = vst [vmem:[#allocation3 + $0x3c] sm:$0x8] %v1151_v34 }
 0x23e   :  { %v1873_v32 = vld [vmem:[#allocation3 + $0x34] ss:$8 sps:$4 sm:$0xff]  }
 0x23f   :  { %1385 = vmatprep.mubr.bf16.mxu1 %v1873_v32 }
 0x240   :  { %1386 = vmatmul.mubr.bf16.gmra.mxu1 %v1875_v33 }
 0x2dd   :  { %v1744_v35 = vpop.f32.mrf.mxu0 }
 0x2df   :  { %v1745_v36 = vpop.f32.mrf.mxu0 }
 0x2e0   :  { %v1746_v49 = vadd.f32 %v1745_v36, %v1744_v35 }
 0x2e1   :  { %v1747_v37 = vpop.f32.mrf.mxu0 }
 0x2e2   :  { %v1394_v38 = vmax.f32 %v1746_v49, 0.0 }
 0x2e3   :  { %v1748_v41 = vpop.f32.mrf.mxu0 }
 0x2e4   :  { %v1749_v42 = vadd.f32 %v1748_v41, %v1747_v37  ;;  %v1407_v43 = vmul.f32 %v1583_v39, %v1394_v38 }
 0x2e6   :  { %v1395_v44 = vmax.f32 %v1749_v42, 0.0  ;;  %v1420_v46 = vadd.f32 %v1584_v26, %v1407_v43 }
 0x2e8   :  { %v1408_v45 = vmul.f32 %v1583_v39, %v1395_v44 }
 0x2ea   :  { %v1421_v47 = vadd.f32 %v1584_v26, %v1408_v45 }
 0x2ec   :  { %v1628_v48 = vpack.c.bf16 %v1421_v47, %v1420_v46 }
 0x2ee   :  { %v1756_v50 = vpop.f32.mrf.mxu1  ;;  %1629 = vst [vmem:[#allocation12] sm:$0xff] %v1628_v48  }
 0x2ef   :  { %v1750_v52 = vpop.f32.mrf.mxu0 }
 0x2f0   :  { %v1757_v53 = vpop.f32.mrf.mxu1 }
 0x2f1   :  { %v1758_v54 = vadd.f32 %v1757_v53, %v1756_v50  ;;  %v1751_v55 = vpop.f32.mrf.mxu0 }
 0x2f2   :  { %v1752_v57 = vadd.f32 %v1751_v55, %v1750_v52  ;;  %v1759_v58 = vpop.f32.mrf.mxu1 }
 0x2f3   :  { %v1398_v59 = vmax.f32 %v1758_v54, 0.0  ;;  %v1753_v60 = vpop.f32.mrf.mxu0 }
 0x2f4   :  { %v1396_v61 = vmax.f32 %v1752_v57, 0.0  ;;  %v1760_v62 = vpop.f32.mrf.mxu1 }
 0x2f5   :  { %v1761_v63 = vadd.f32 %v1760_v62, %v1759_v58  ;;  %v1754_v40 = vpop.f32.mrf.mxu0  ;;  %v1411_v1 = vmul.f32 %v1583_v39, %v1398_v59 }
 0x2f6   :  { %v1755_v0 = vadd.f32 %v1754_v40, %v1753_v60  ;;  %v1409_v10 = vmul.f32 %v1583_v39, %v1396_v61 }
 0x2f7   :  { %v1399_v56 = vmax.f32 %v1761_v63, 0.0  ;;  %v1424_v5 = vadd.f32 %v1584_v26, %v1411_v1 }
 0x2f8   :  { %v1397_v2 = vmax.f32 %v1755_v0, 0.0  ;;  %v1422_v7 = vadd.f32 %v1584_v26, %v1409_v10 }
 0x2f9   :  { %v1412_v3 = vmul.f32 %v1583_v39, %v1399_v56 }
 0x2fa   :  { %v1410_v4 = vmul.f32 %v1583_v39, %v1397_v2 }
 0x2fb   :  { %v1425_v6 = vadd.f32 %v1584_v26, %v1412_v3 }
 0x2fc   :  { %v1423_v8 = vadd.f32 %v1584_v26, %v1410_v4 }
 0x2fd   :  { %v1638_v9 = vpack.c.bf16 %v1425_v6, %v1424_v5 }
 0x2fe   :  { %v1633_v11 = vpack.c.bf16 %v1423_v8, %v1422_v7 }
 0x2ff   :  { %1646 = vst [vmem:[#allocation12 + $0x10] sm:$0xff] %v1638_v9  }
 0x300   :  { %1645 = vst [vmem:[#allocation12 + $0x8] sm:$0xff] %v1633_v11   ;;  %v1762_v12 = vpop.f32.mrf.mxu1 }
 0x302   :  { %v1763_v13 = vpop.f32.mrf.mxu1 }
 0x303   :  { %v1764_v15 = vadd.f32 %v1763_v13, %v1762_v12 }
 0x304   :  { %v1765_v16 = vpop.f32.mrf.mxu1 }
 0x305   :  { %v1400_v17 = vmax.f32 %v1764_v15, 0.0 }
 0x306   :  { %v1766_v18 = vpop.f32.mrf.mxu1 }
 0x307   :  { %v1767_v19 = vadd.f32 %v1766_v18, %v1765_v16  ;;  %v1413_v20 = vmul.f32 %v1583_v39, %v1400_v17 }
 0x309   :  { %v1401_v21 = vmax.f32 %v1767_v19, 0.0  ;;  %v1426_v22 = vadd.f32 %v1584_v26, %v1413_v20 }
 0x30b   :  { %v1414_v14 = vmul.f32 %v1583_v39, %v1401_v21 }
 0x30d   :  { %v1427_v23 = vadd.f32 %v1584_v26, %v1414_v14 }
 0x30f   :  { %v1643_v24 = vpack.c.bf16 %v1427_v23, %v1426_v22 }
 0x311   :  { %1647 = vst [vmem:[#allocation12 + $0x18] sm:$0xff] %v1643_v24  }
 0x312   :  { %1967 = shalt.err (!%p1964_p10)
}
 0x313   :  { %1479 = dma.vmem_to_hbm [thread:$0]  %s1474_s17, 512, %s2268_s5, [#allocation6], %s1985_s21, %s1985_s21, %s1986_s22  }
 0x314   :  { %1982 = dma.done.wait [#allocation6], 512  }
 0x315   :  { %1983 = vsyncadd [#allocation6], 4294966784 }
 0x316   :  { %1483 = vsyncpa [#allocation5], 1 }
 0x317   :  { %1484 = vsyncpa [#allocation8], 1 }
 0x318   :  { %1485 = vsyncpa [#allocation11], 1 }
 0x319   :  { %1486 = vsyncpa [#allocation6], 1 }

</bundles_post_ra>
